<compile_context>
chip_gen: v6e
topology: v6e:2x2x1
jax: 0.10.0
libtpu: 0.0.40
codegen_flags: <defaults>
</compile_context>

<pallas_src>
import functools

import jax
import jax.numpy as jnp
from jax import lax
from jax.experimental import pallas as pl
from jax.experimental.pallas import tpu as pltpu


def _round_up(a, b):
    return ((a + b - 1) // b) * b


def _lstm_meanpool_kernel(gx_ref, whh_ref, out_ref):
    """gx_ref:  (S, 4, Nb, H) precomputed x@W_ih^T + (b_ih+b_hh), gate-major (i,f,g,o)
    whh_ref: (4, H, H) with whh_ref[k] = W_hh[k]^T  (so h @ whh_ref[k] == h @ W_hh_k^T)
    out_ref: (Nb, H) mean over the S hidden states."""
    S = gx_ref.shape[0]
    Nb, H = out_ref.shape

    # Recurrent weights loaded once, kept live across the unrolled loop.
    wi = whh_ref[0]
    wf = whh_ref[1]
    wg = whh_ref[2]
    wo = whh_ref[3]

    # State and accumulator carried in registers (no VMEM scratch round-trips).
    h = jnp.zeros((Nb, H), jnp.float32)
    c = jnp.zeros((Nb, H), jnp.float32)
    acc = jnp.zeros((Nb, H), jnp.float32)

    # Statically unrolled recurrence: per step only a small h-dependent matmul
    # per gate plus EUP/VPU elementwise work; gx loads are h-independent and
    # can be issued ahead by the scheduler.
    for t in range(S):
        i_g = jax.nn.sigmoid(
            gx_ref[t, 0] + jnp.dot(h, wi, preferred_element_type=jnp.float32))
        f_g = jax.nn.sigmoid(
            gx_ref[t, 1] + jnp.dot(h, wf, preferred_element_type=jnp.float32))
        g_g = jnp.tanh(
            gx_ref[t, 2] + jnp.dot(h, wg, preferred_element_type=jnp.float32))
        o_g = jax.nn.sigmoid(
            gx_ref[t, 3] + jnp.dot(h, wo, preferred_element_type=jnp.float32))
        c = f_g * c + i_g * g_g
        h = o_g * jnp.tanh(c)
        acc = acc + h

    out_ref[...] = acc * (1.0 / S)


@functools.partial(jax.jit, static_argnames=("hidden_size",))
def lstm_mean_pool(x, w_ih, w_hh, b_ih, b_hh, *, hidden_size):
    """Equivalent of LSTM_MeanPool.forward for 1 layer, unidirectional.

    x: (..., S, E) float32   (PyTorch batch_first LSTM input convention)
    w_ih: (4H, E), w_hh: (4H, H), b_ih/b_hh: (4H,)  (PyTorch parameter shapes)
    returns: (..., H)
    """
    H = hidden_size
    lead = x.shape[:-2]
    S, E = x.shape[-2], x.shape[-1]
    xf = x.reshape((-1, S, E)).astype(jnp.float32)   # input.view(-1, S, E)
    N = xf.shape[0]

    # Pad flattened batch to a sublane multiple and pick a batch tile small
    # enough that the h/c/acc carries comfortably stay in vregs.
    Nb = min(32, _round_up(N, 8))
    N_pad = _round_up(N, Nb)
    xp = jnp.pad(xf, ((0, N_pad - N), (0, 0), (0, 0)))
    x_tm = jnp.transpose(xp, (1, 0, 2))              # time-major (S, N_pad, E)

    # Hoisted input projection (one big matmul, done by XLA in the wrapper):
    # gate-major pre-gates gx[s, k, n, :] = x_s @ W_ih[k]^T + (b_ih+b_hh)[k].
    wih_r = w_ih.reshape(4, H, E)                    # [W_ii; W_if; W_ig; W_io]
    bias_r = (b_ih + b_hh).reshape(4, H)
    gx = jnp.einsum("sne,khe->sknh", x_tm, wih_r,
                    precision=lax.Precision.HIGHEST) + bias_r[None, :, None, :]
    gx = gx.astype(jnp.float32)                      # (S, 4, N_pad, H)

    # Recurrent weights, gate-major and pre-transposed: whh_r[k] = W_hh[k]^T.
    whh_r = jnp.transpose(w_hh.reshape(4, H, H), (0, 2, 1)).astype(jnp.float32)

    grid = (N_pad // Nb,)
    out = pl.pallas_call(
        _lstm_meanpool_kernel,
        out_shape=jax.ShapeDtypeStruct((N_pad, H), jnp.float32),
        grid=grid,
        in_specs=[
            pl.BlockSpec((S, 4, Nb, H), lambda i: (0, 0, i, 0)),
            pl.BlockSpec((4, H, H), lambda i: (0, 0, 0)),   # weights stay resident
        ],
        out_specs=pl.BlockSpec((Nb, H), lambda i: (i, 0)),
        compiler_params=pltpu.CompilerParams(
            dimension_semantics=("parallel",),
            vmem_limit_bytes=32 * 1024 * 1024,
        ),
    )(gx, whh_r)

    # Drop batch padding; output.view(shape) with the seq dim removed.
    return out[:N].reshape(lead + (H,))


def lstm_mean_pool_ref(x, w_ih, w_hh, b_ih, b_hh, *, hidden_size):
    """Pure-JAX reference (mirrors PyTorch nn.LSTM math) for validation."""
    H = hidden_size
    lead = x.shape[:-2]
    S, E = x.shape[-2], x.shape[-1]
    xf = x.reshape((-1, S, E))
    N = xf.shape[0]
    x_tm = jnp.transpose(xf, (1, 0, 2))

    def step(carry, x_t):
        h, c = carry
        gates = x_t @ w_ih.T + h @ w_hh.T + b_ih + b_hh
        i_g = jax.nn.sigmoid(gates[:, 0 * H:1 * H])
        f_g = jax.nn.sigmoid(gates[:, 1 * H:2 * H])
        g_g = jnp.tanh(gates[:, 2 * H:3 * H])
        o_g = jax.nn.sigmoid(gates[:, 3 * H:4 * H])
        c = f_g * c + i_g * g_g
        h = o_g * jnp.tanh(c)
        return (h, c), h

    h0 = jnp.zeros((N, H), jnp.float32)
    c0 = jnp.zeros((N, H), jnp.float32)
    _, hs = lax.scan(step, (h0, c0), x_tm)
    return jnp.mean(hs, axis=0).reshape(lead + (H,))


if __name__ == "__main__":
    # Small shapes consistent with the module: batch=2, seq=8, embed=16, hidden=32.
    B, S, E, H = 2, 8, 16, 32
    key = jax.random.PRNGKey(0)
    kx, k1, k2, k3, k4 = jax.random.split(key, 5)

    x = jax.random.normal(kx, (B, S, E), dtype=jnp.float32)

    # Deterministic PyTorch-style init: U(-1/sqrt(H), 1/sqrt(H)).
    bound = 1.0 / jnp.sqrt(jnp.float32(H))
    w_ih = jax.random.uniform(k1, (4 * H, E), jnp.float32, -bound, bound)
    w_hh = jax.random.uniform(k2, (4 * H, H), jnp.float32, -bound, bound)
    b_ih = jax.random.uniform(k3, (4 * H,), jnp.float32, -bound, bound)
    b_hh = jax.random.uniform(k4, (4 * H,), jnp.float32, -bound, bound)

    out = lstm_mean_pool(x, w_ih, w_hh, b_ih, b_hh, hidden_size=H)
    out = jax.block_until_ready(out)

    ref = lstm_mean_pool_ref(x, w_ih, w_hh, b_ih, b_hh, hidden_size=H)
    assert out.shape == (B, H), out.shape
    assert jnp.allclose(out, ref, rtol=1e-2, atol=1e-3), (
        float(jnp.max(jnp.abs(out - ref))))

    # TODO(synk): multi-layer / bidirectional stacking and inter-layer dropout
    # are not exercised (args pin num_layers=1, bidirectional=False).
    print("KERNEL_OK")
</pallas_src>

<mosaic_0001>
module attributes {stable_mosaic.version = 11 : i64} {
  func.func @_lstm_meanpool_kernel(%arg0: i32, %arg1: memref<8x4x8x32xf32, #tpu.memory_space<vmem>>, %arg2: memref<4x32x32xf32, #tpu.memory_space<vmem>>, %arg3: memref<8x32xf32, #tpu.memory_space<vmem>>) attributes {dimension_semantics = [#tpu.dimension_semantics<parallel>], iteration_bounds = array<i64: 1>, scalar_prefetch = 0 : i64, scratch_operands = 0 : i64, tpu.core_type = #tpu.core_type<tc>, window_params = [{transform_indices = @transform_0, window_bounds = array<i64: 8, 4, 8, 32>}, {pipeline_mode = #tpu.pipeline_mode<synchronous>, transform_indices = @transform_1, window_bounds = array<i64: 4, 32, 32>}, {transform_indices = @transform_2, window_bounds = array<i64: 8, 32>}]} {
    %c0 = arith.constant 0 : index
    %c0_0 = arith.constant 0 : index
    %c0_1 = arith.constant 0 : index
    %0 = vector.load %arg2[%c0, %c0_0, %c0_1] : memref<4x32x32xf32, #tpu.memory_space<vmem>>, vector<1x32x32xf32>
    %1 = vector.shape_cast %0 : vector<1x32x32xf32> to vector<32x32xf32>
    %c1 = arith.constant 1 : index
    %c0_2 = arith.constant 0 : index
    %c0_3 = arith.constant 0 : index
    %2 = vector.load %arg2[%c1, %c0_2, %c0_3] : memref<4x32x32xf32, #tpu.memory_space<vmem>>, vector<1x32x32xf32>
    %3 = vector.shape_cast %2 : vector<1x32x32xf32> to vector<32x32xf32>
    %c2 = arith.constant 2 : index
    %c0_4 = arith.constant 0 : index
    %c0_5 = arith.constant 0 : index
    %4 = vector.load %arg2[%c2, %c0_4, %c0_5] : memref<4x32x32xf32, #tpu.memory_space<vmem>>, vector<1x32x32xf32>
    %5 = vector.shape_cast %4 : vector<1x32x32xf32> to vector<32x32xf32>
    %c3 = arith.constant 3 : index
    %c0_6 = arith.constant 0 : index
    %c0_7 = arith.constant 0 : index
    %6 = vector.load %arg2[%c3, %c0_6, %c0_7] : memref<4x32x32xf32, #tpu.memory_space<vmem>>, vector<1x32x32xf32>
    %7 = vector.shape_cast %6 : vector<1x32x32xf32> to vector<32x32xf32>
    %cst = arith.constant 0.000000e+00 : f32
    %8 = vector.broadcast %cst : f32 to vector<8x32xf32>
    %cst_8 = arith.constant 0.000000e+00 : f32
    %9 = vector.broadcast %cst_8 : f32 to vector<8x32xf32>
    %cst_9 = arith.constant 0.000000e+00 : f32
    %10 = vector.broadcast %cst_9 : f32 to vector<8x32xf32>
    %c0_10 = arith.constant 0 : index
    %c0_11 = arith.constant 0 : index
    %c0_12 = arith.constant 0 : index
    %c0_13 = arith.constant 0 : index
    %11 = vector.load %arg1[%c0_10, %c0_11, %c0_12, %c0_13] : memref<8x4x8x32xf32, #tpu.memory_space<vmem>>, vector<1x1x8x32xf32>
    %12 = vector.shape_cast %11 : vector<1x1x8x32xf32> to vector<8x32xf32>
    %cst_14 = arith.constant dense<0.000000e+00> : vector<8x32xf32>
    %13 = tpu.matmul %8, %1, %cst_14 {dimension_numbers = #tpu.dot_dimension_numbers<[1], [0], [0], [1], [0, 0, 1, 1], [], []>} : vector<8x32xf32>, vector<32x32xf32>, vector<8x32xf32> -> vector<8x32xf32>
    %14 = arith.addf %12, %13 : vector<8x32xf32>
    %15 = arith.negf %14 : vector<8x32xf32>
    %16 = math.exp %15 : vector<8x32xf32>
    %cst_15 = arith.constant 1.000000e+00 : f32
    %17 = vector.broadcast %cst_15 : f32 to vector<8x32xf32>
    %18 = arith.addf %17, %16 : vector<8x32xf32>
    %19 = arith.divf %17, %18 : vector<8x32xf32>
    %c0_16 = arith.constant 0 : index
    %c1_17 = arith.constant 1 : index
    %c0_18 = arith.constant 0 : index
    %c0_19 = arith.constant 0 : index
    %20 = vector.load %arg1[%c0_16, %c1_17, %c0_18, %c0_19] : memref<8x4x8x32xf32, #tpu.memory_space<vmem>>, vector<1x1x8x32xf32>
    %21 = vector.shape_cast %20 : vector<1x1x8x32xf32> to vector<8x32xf32>
    %cst_20 = arith.constant dense<0.000000e+00> : vector<8x32xf32>
    %22 = tpu.matmul %8, %3, %cst_20 {dimension_numbers = #tpu.dot_dimension_numbers<[1], [0], [0], [1], [0, 0, 1, 1], [], []>} : vector<8x32xf32>, vector<32x32xf32>, vector<8x32xf32> -> vector<8x32xf32>
    %23 = arith.addf %21, %22 : vector<8x32xf32>
    %24 = arith.negf %23 : vector<8x32xf32>
    %25 = math.exp %24 : vector<8x32xf32>
    %cst_21 = arith.constant 1.000000e+00 : f32
    %26 = vector.broadcast %cst_21 : f32 to vector<8x32xf32>
    %27 = arith.addf %26, %25 : vector<8x32xf32>
    %28 = arith.divf %26, %27 : vector<8x32xf32>
    %c0_22 = arith.constant 0 : index
    %c2_23 = arith.constant 2 : index
    %c0_24 = arith.constant 0 : index
    %c0_25 = arith.constant 0 : index
    %29 = vector.load %arg1[%c0_22, %c2_23, %c0_24, %c0_25] : memref<8x4x8x32xf32, #tpu.memory_space<vmem>>, vector<1x1x8x32xf32>
    %30 = vector.shape_cast %29 : vector<1x1x8x32xf32> to vector<8x32xf32>
    %cst_26 = arith.constant dense<0.000000e+00> : vector<8x32xf32>
    %31 = tpu.matmul %8, %5, %cst_26 {dimension_numbers = #tpu.dot_dimension_numbers<[1], [0], [0], [1], [0, 0, 1, 1], [], []>} : vector<8x32xf32>, vector<32x32xf32>, vector<8x32xf32> -> vector<8x32xf32>
    %32 = arith.addf %30, %31 : vector<8x32xf32>
    %33 = math.tanh %32 : vector<8x32xf32>
    %c0_27 = arith.constant 0 : index
    %c3_28 = arith.constant 3 : index
    %c0_29 = arith.constant 0 : index
    %c0_30 = arith.constant 0 : index
    %34 = vector.load %arg1[%c0_27, %c3_28, %c0_29, %c0_30] : memref<8x4x8x32xf32, #tpu.memory_space<vmem>>, vector<1x1x8x32xf32>
    %35 = vector.shape_cast %34 : vector<1x1x8x32xf32> to vector<8x32xf32>
    %cst_31 = arith.constant dense<0.000000e+00> : vector<8x32xf32>
    %36 = tpu.matmul %8, %7, %cst_31 {dimension_numbers = #tpu.dot_dimension_numbers<[1], [0], [0], [1], [0, 0, 1, 1], [], []>} : vector<8x32xf32>, vector<32x32xf32>, vector<8x32xf32> -> vector<8x32xf32>
    %37 = arith.addf %35, %36 : vector<8x32xf32>
    %38 = arith.negf %37 : vector<8x32xf32>
    %39 = math.exp %38 : vector<8x32xf32>
    %cst_32 = arith.constant 1.000000e+00 : f32
    %40 = vector.broadcast %cst_32 : f32 to vector<8x32xf32>
    %41 = arith.addf %40, %39 : vector<8x32xf32>
    %42 = arith.divf %40, %41 : vector<8x32xf32>
    %43 = arith.mulf %28, %9 : vector<8x32xf32>
    %44 = arith.mulf %19, %33 : vector<8x32xf32>
    %45 = arith.addf %43, %44 : vector<8x32xf32>
    %46 = math.tanh %45 : vector<8x32xf32>
    %47 = arith.mulf %42, %46 : vector<8x32xf32>
    %48 = arith.addf %10, %47 : vector<8x32xf32>
    %c1_33 = arith.constant 1 : index
    %c0_34 = arith.constant 0 : index
    %c0_35 = arith.constant 0 : index
    %c0_36 = arith.constant 0 : index
    %49 = vector.load %arg1[%c1_33, %c0_34, %c0_35, %c0_36] : memref<8x4x8x32xf32, #tpu.memory_space<vmem>>, vector<1x1x8x32xf32>
    %50 = vector.shape_cast %49 : vector<1x1x8x32xf32> to vector<8x32xf32>
    %cst_37 = arith.constant dense<0.000000e+00> : vector<8x32xf32>
    %51 = tpu.matmul %47, %1, %cst_37 {dimension_numbers = #tpu.dot_dimension_numbers<[1], [0], [0], [1], [0, 0, 1, 1], [], []>} : vector<8x32xf32>, vector<32x32xf32>, vector<8x32xf32> -> vector<8x32xf32>
    %52 = arith.addf %50, %51 : vector<8x32xf32>
    %53 = arith.negf %52 : vector<8x32xf32>
    %54 = math.exp %53 : vector<8x32xf32>
    %cst_38 = arith.constant 1.000000e+00 : f32
    %55 = vector.broadcast %cst_38 : f32 to vector<8x32xf32>
    %56 = arith.addf %55, %54 : vector<8x32xf32>
    %57 = arith.divf %55, %56 : vector<8x32xf32>
    %c1_39 = arith.constant 1 : index
    %c1_40 = arith.constant 1 : index
    %c0_41 = arith.constant 0 : index
    %c0_42 = arith.constant 0 : index
    %58 = vector.load %arg1[%c1_39, %c1_40, %c0_41, %c0_42] : memref<8x4x8x32xf32, #tpu.memory_space<vmem>>, vector<1x1x8x32xf32>
    %59 = vector.shape_cast %58 : vector<1x1x8x32xf32> to vector<8x32xf32>
    %cst_43 = arith.constant dense<0.000000e+00> : vector<8x32xf32>
    %60 = tpu.matmul %47, %3, %cst_43 {dimension_numbers = #tpu.dot_dimension_numbers<[1], [0], [0], [1], [0, 0, 1, 1], [], []>} : vector<8x32xf32>, vector<32x32xf32>, vector<8x32xf32> -> vector<8x32xf32>
    %61 = arith.addf %59, %60 : vector<8x32xf32>
    %62 = arith.negf %61 : vector<8x32xf32>
    %63 = math.exp %62 : vector<8x32xf32>
    %cst_44 = arith.constant 1.000000e+00 : f32
    %64 = vector.broadcast %cst_44 : f32 to vector<8x32xf32>
    %65 = arith.addf %64, %63 : vector<8x32xf32>
    %66 = arith.divf %64, %65 : vector<8x32xf32>
    %c1_45 = arith.constant 1 : index
    %c2_46 = arith.constant 2 : index
    %c0_47 = arith.constant 0 : index
    %c0_48 = arith.constant 0 : index
    %67 = vector.load %arg1[%c1_45, %c2_46, %c0_47, %c0_48] : memref<8x4x8x32xf32, #tpu.memory_space<vmem>>, vector<1x1x8x32xf32>
    %68 = vector.shape_cast %67 : vector<1x1x8x32xf32> to vector<8x32xf32>
    %cst_49 = arith.constant dense<0.000000e+00> : vector<8x32xf32>
    %69 = tpu.matmul %47, %5, %cst_49 {dimension_numbers = #tpu.dot_dimension_numbers<[1], [0], [0], [1], [0, 0, 1, 1], [], []>} : vector<8x32xf32>, vector<32x32xf32>, vector<8x32xf32> -> vector<8x32xf32>
    %70 = arith.addf %68, %69 : vector<8x32xf32>
    %71 = math.tanh %70 : vector<8x32xf32>
    %c1_50 = arith.constant 1 : index
    %c3_51 = arith.constant 3 : index
    %c0_52 = arith.constant 0 : index
    %c0_53 = arith.constant 0 : index
    %72 = vector.load %arg1[%c1_50, %c3_51, %c0_52, %c0_53] : memref<8x4x8x32xf32, #tpu.memory_space<vmem>>, vector<1x1x8x32xf32>
    %73 = vector.shape_cast %72 : vector<1x1x8x32xf32> to vector<8x32xf32>
    %cst_54 = arith.constant dense<0.000000e+00> : vector<8x32xf32>
    %74 = tpu.matmul %47, %7, %cst_54 {dimension_numbers = #tpu.dot_dimension_numbers<[1], [0], [0], [1], [0, 0, 1, 1], [], []>} : vector<8x32xf32>, vector<32x32xf32>, vector<8x32xf32> -> vector<8x32xf32>
    %75 = arith.addf %73, %74 : vector<8x32xf32>
    %76 = arith.negf %75 : vector<8x32xf32>
    %77 = math.exp %76 : vector<8x32xf32>
    %cst_55 = arith.constant 1.000000e+00 : f32
    %78 = vector.broadcast %cst_55 : f32 to vector<8x32xf32>
    %79 = arith.addf %78, %77 : vector<8x32xf32>
    %80 = arith.divf %78, %79 : vector<8x32xf32>
    %81 = arith.mulf %66, %45 : vector<8x32xf32>
    %82 = arith.mulf %57, %71 : vector<8x32xf32>
    %83 = arith.addf %81, %82 : vector<8x32xf32>
    %84 = math.tanh %83 : vector<8x32xf32>
    %85 = arith.mulf %80, %84 : vector<8x32xf32>
    %86 = arith.addf %48, %85 : vector<8x32xf32>
    %c2_56 = arith.constant 2 : index
    %c0_57 = arith.constant 0 : index
    %c0_58 = arith.constant 0 : index
    %c0_59 = arith.constant 0 : index
    %87 = vector.load %arg1[%c2_56, %c0_57, %c0_58, %c0_59] : memref<8x4x8x32xf32, #tpu.memory_space<vmem>>, vector<1x1x8x32xf32>
    %88 = vector.shape_cast %87 : vector<1x1x8x32xf32> to vector<8x32xf32>
    %cst_60 = arith.constant dense<0.000000e+00> : vector<8x32xf32>
    %89 = tpu.matmul %85, %1, %cst_60 {dimension_numbers = #tpu.dot_dimension_numbers<[1], [0], [0], [1], [0, 0, 1, 1], [], []>} : vector<8x32xf32>, vector<32x32xf32>, vector<8x32xf32> -> vector<8x32xf32>
    %90 = arith.addf %88, %89 : vector<8x32xf32>
    %91 = arith.negf %90 : vector<8x32xf32>
    %92 = math.exp %91 : vector<8x32xf32>
    %cst_61 = arith.constant 1.000000e+00 : f32
    %93 = vector.broadcast %cst_61 : f32 to vector<8x32xf32>
    %94 = arith.addf %93, %92 : vector<8x32xf32>
    %95 = arith.divf %93, %94 : vector<8x32xf32>
    %c2_62 = arith.constant 2 : index
    %c1_63 = arith.constant 1 : index
    %c0_64 = arith.constant 0 : index
    %c0_65 = arith.constant 0 : index
    %96 = vector.load %arg1[%c2_62, %c1_63, %c0_64, %c0_65] : memref<8x4x8x32xf32, #tpu.memory_space<vmem>>, vector<1x1x8x32xf32>
    %97 = vector.shape_cast %96 : vector<1x1x8x32xf32> to vector<8x32xf32>
    %cst_66 = arith.constant dense<0.000000e+00> : vector<8x32xf32>
    %98 = tpu.matmul %85, %3, %cst_66 {dimension_numbers = #tpu.dot_dimension_numbers<[1], [0], [0], [1], [0, 0, 1, 1], [], []>} : vector<8x32xf32>, vector<32x32xf32>, vector<8x32xf32> -> vector<8x32xf32>
    %99 = arith.addf %97, %98 : vector<8x32xf32>
    %100 = arith.negf %99 : vector<8x32xf32>
    %101 = math.exp %100 : vector<8x32xf32>
    %cst_67 = arith.constant 1.000000e+00 : f32
    %102 = vector.broadcast %cst_67 : f32 to vector<8x32xf32>
    %103 = arith.addf %102, %101 : vector<8x32xf32>
    %104 = arith.divf %102, %103 : vector<8x32xf32>
    %c2_68 = arith.constant 2 : index
    %c2_69 = arith.constant 2 : index
    %c0_70 = arith.constant 0 : index
    %c0_71 = arith.constant 0 : index
    %105 = vector.load %arg1[%c2_68, %c2_69, %c0_70, %c0_71] : memref<8x4x8x32xf32, #tpu.memory_space<vmem>>, vector<1x1x8x32xf32>
    %106 = vector.shape_cast %105 : vector<1x1x8x32xf32> to vector<8x32xf32>
    %cst_72 = arith.constant dense<0.000000e+00> : vector<8x32xf32>
    %107 = tpu.matmul %85, %5, %cst_72 {dimension_numbers = #tpu.dot_dimension_numbers<[1], [0], [0], [1], [0, 0, 1, 1], [], []>} : vector<8x32xf32>, vector<32x32xf32>, vector<8x32xf32> -> vector<8x32xf32>
    %108 = arith.addf %106, %107 : vector<8x32xf32>
    %109 = math.tanh %108 : vector<8x32xf32>
    %c2_73 = arith.constant 2 : index
    %c3_74 = arith.constant 3 : index
    %c0_75 = arith.constant 0 : index
    %c0_76 = arith.constant 0 : index
    %110 = vector.load %arg1[%c2_73, %c3_74, %c0_75, %c0_76] : memref<8x4x8x32xf32, #tpu.memory_space<vmem>>, vector<1x1x8x32xf32>
    %111 = vector.shape_cast %110 : vector<1x1x8x32xf32> to vector<8x32xf32>
    %cst_77 = arith.constant dense<0.000000e+00> : vector<8x32xf32>
    %112 = tpu.matmul %85, %7, %cst_77 {dimension_numbers = #tpu.dot_dimension_numbers<[1], [0], [0], [1], [0, 0, 1, 1], [], []>} : vector<8x32xf32>, vector<32x32xf32>, vector<8x32xf32> -> vector<8x32xf32>
    %113 = arith.addf %111, %112 : vector<8x32xf32>
    %114 = arith.negf %113 : vector<8x32xf32>
    %115 = math.exp %114 : vector<8x32xf32>
    %cst_78 = arith.constant 1.000000e+00 : f32
    %116 = vector.broadcast %cst_78 : f32 to vector<8x32xf32>
    %117 = arith.addf %116, %115 : vector<8x32xf32>
    %118 = arith.divf %116, %117 : vector<8x32xf32>
    %119 = arith.mulf %104, %83 : vector<8x32xf32>
    %120 = arith.mulf %95, %109 : vector<8x32xf32>
    %121 = arith.addf %119, %120 : vector<8x32xf32>
    %122 = math.tanh %121 : vector<8x32xf32>
    %123 = arith.mulf %118, %122 : vector<8x32xf32>
    %124 = arith.addf %86, %123 : vector<8x32xf32>
    %c3_79 = arith.constant 3 : index
    %c0_80 = arith.constant 0 : index
    %c0_81 = arith.constant 0 : index
    %c0_82 = arith.constant 0 : index
    %125 = vector.load %arg1[%c3_79, %c0_80, %c0_81, %c0_82] : memref<8x4x8x32xf32, #tpu.memory_space<vmem>>, vector<1x1x8x32xf32>
    %126 = vector.shape_cast %125 : vector<1x1x8x32xf32> to vector<8x32xf32>
    %cst_83 = arith.constant dense<0.000000e+00> : vector<8x32xf32>
    %127 = tpu.matmul %123, %1, %cst_83 {dimension_numbers = #tpu.dot_dimension_numbers<[1], [0], [0], [1], [0, 0, 1, 1], [], []>} : vector<8x32xf32>, vector<32x32xf32>, vector<8x32xf32> -> vector<8x32xf32>
    %128 = arith.addf %126, %127 : vector<8x32xf32>
    %129 = arith.negf %128 : vector<8x32xf32>
    %130 = math.exp %129 : vector<8x32xf32>
    %cst_84 = arith.constant 1.000000e+00 : f32
    %131 = vector.broadcast %cst_84 : f32 to vector<8x32xf32>
    %132 = arith.addf %131, %130 : vector<8x32xf32>
    %133 = arith.divf %131, %132 : vector<8x32xf32>
    %c3_85 = arith.constant 3 : index
    %c1_86 = arith.constant 1 : index
    %c0_87 = arith.constant 0 : index
    %c0_88 = arith.constant 0 : index
    %134 = vector.load %arg1[%c3_85, %c1_86, %c0_87, %c0_88] : memref<8x4x8x32xf32, #tpu.memory_space<vmem>>, vector<1x1x8x32xf32>
    %135 = vector.shape_cast %134 : vector<1x1x8x32xf32> to vector<8x32xf32>
    %cst_89 = arith.constant dense<0.000000e+00> : vector<8x32xf32>
    %136 = tpu.matmul %123, %3, %cst_89 {dimension_numbers = #tpu.dot_dimension_numbers<[1], [0], [0], [1], [0, 0, 1, 1], [], []>} : vector<8x32xf32>, vector<32x32xf32>, vector<8x32xf32> -> vector<8x32xf32>
    %137 = arith.addf %135, %136 : vector<8x32xf32>
    %138 = arith.negf %137 : vector<8x32xf32>
    %139 = math.exp %138 : vector<8x32xf32>
    %cst_90 = arith.constant 1.000000e+00 : f32
    %140 = vector.broadcast %cst_90 : f32 to vector<8x32xf32>
    %141 = arith.addf %140, %139 : vector<8x32xf32>
    %142 = arith.divf %140, %141 : vector<8x32xf32>
    %c3_91 = arith.constant 3 : index
    %c2_92 = arith.constant 2 : index
    %c0_93 = arith.constant 0 : index
    %c0_94 = arith.constant 0 : index
    %143 = vector.load %arg1[%c3_91, %c2_92, %c0_93, %c0_94] : memref<8x4x8x32xf32, #tpu.memory_space<vmem>>, vector<1x1x8x32xf32>
    %144 = vector.shape_cast %143 : vector<1x1x8x32xf32> to vector<8x32xf32>
    %cst_95 = arith.constant dense<0.000000e+00> : vector<8x32xf32>
    %145 = tpu.matmul %123, %5, %cst_95 {dimension_numbers = #tpu.dot_dimension_numbers<[1], [0], [0], [1], [0, 0, 1, 1], [], []>} : vector<8x32xf32>, vector<32x32xf32>, vector<8x32xf32> -> vector<8x32xf32>
    %146 = arith.addf %144, %145 : vector<8x32xf32>
    %147 = math.tanh %146 : vector<8x32xf32>
    %c3_96 = arith.constant 3 : index
    %c3_97 = arith.constant 3 : index
    %c0_98 = arith.constant 0 : index
    %c0_99 = arith.constant 0 : index
    %148 = vector.load %arg1[%c3_96, %c3_97, %c0_98, %c0_99] : memref<8x4x8x32xf32, #tpu.memory_space<vmem>>, vector<1x1x8x32xf32>
    %149 = vector.shape_cast %148 : vector<1x1x8x32xf32> to vector<8x32xf32>
    %cst_100 = arith.constant dense<0.000000e+00> : vector<8x32xf32>
    %150 = tpu.matmul %123, %7, %cst_100 {dimension_numbers = #tpu.dot_dimension_numbers<[1], [0], [0], [1], [0, 0, 1, 1], [], []>} : vector<8x32xf32>, vector<32x32xf32>, vector<8x32xf32> -> vector<8x32xf32>
    %151 = arith.addf %149, %150 : vector<8x32xf32>
    %152 = arith.negf %151 : vector<8x32xf32>
    %153 = math.exp %152 : vector<8x32xf32>
    %cst_101 = arith.constant 1.000000e+00 : f32
    %154 = vector.broadcast %cst_101 : f32 to vector<8x32xf32>
    %155 = arith.addf %154, %153 : vector<8x32xf32>
    %156 = arith.divf %154, %155 : vector<8x32xf32>
    %157 = arith.mulf %142, %121 : vector<8x32xf32>
    %158 = arith.mulf %133, %147 : vector<8x32xf32>
    %159 = arith.addf %157, %158 : vector<8x32xf32>
    %160 = math.tanh %159 : vector<8x32xf32>
    %161 = arith.mulf %156, %160 : vector<8x32xf32>
    %162 = arith.addf %124, %161 : vector<8x32xf32>
    %c4 = arith.constant 4 : index
    %c0_102 = arith.constant 0 : index
    %c0_103 = arith.constant 0 : index
    %c0_104 = arith.constant 0 : index
    %163 = vector.load %arg1[%c4, %c0_102, %c0_103, %c0_104] : memref<8x4x8x32xf32, #tpu.memory_space<vmem>>, vector<1x1x8x32xf32>
    %164 = vector.shape_cast %163 : vector<1x1x8x32xf32> to vector<8x32xf32>
    %cst_105 = arith.constant dense<0.000000e+00> : vector<8x32xf32>
    %165 = tpu.matmul %161, %1, %cst_105 {dimension_numbers = #tpu.dot_dimension_numbers<[1], [0], [0], [1], [0, 0, 1, 1], [], []>} : vector<8x32xf32>, vector<32x32xf32>, vector<8x32xf32> -> vector<8x32xf32>
    %166 = arith.addf %164, %165 : vector<8x32xf32>
    %167 = arith.negf %166 : vector<8x32xf32>
    %168 = math.exp %167 : vector<8x32xf32>
    %cst_106 = arith.constant 1.000000e+00 : f32
    %169 = vector.broadcast %cst_106 : f32 to vector<8x32xf32>
    %170 = arith.addf %169, %168 : vector<8x32xf32>
    %171 = arith.divf %169, %170 : vector<8x32xf32>
    %c4_107 = arith.constant 4 : index
    %c1_108 = arith.constant 1 : index
    %c0_109 = arith.constant 0 : index
    %c0_110 = arith.constant 0 : index
    %172 = vector.load %arg1[%c4_107, %c1_108, %c0_109, %c0_110] : memref<8x4x8x32xf32, #tpu.memory_space<vmem>>, vector<1x1x8x32xf32>
    %173 = vector.shape_cast %172 : vector<1x1x8x32xf32> to vector<8x32xf32>
    %cst_111 = arith.constant dense<0.000000e+00> : vector<8x32xf32>
    %174 = tpu.matmul %161, %3, %cst_111 {dimension_numbers = #tpu.dot_dimension_numbers<[1], [0], [0], [1], [0, 0, 1, 1], [], []>} : vector<8x32xf32>, vector<32x32xf32>, vector<8x32xf32> -> vector<8x32xf32>
    %175 = arith.addf %173, %174 : vector<8x32xf32>
    %176 = arith.negf %175 : vector<8x32xf32>
    %177 = math.exp %176 : vector<8x32xf32>
    %cst_112 = arith.constant 1.000000e+00 : f32
    %178 = vector.broadcast %cst_112 : f32 to vector<8x32xf32>
    %179 = arith.addf %178, %177 : vector<8x32xf32>
    %180 = arith.divf %178, %179 : vector<8x32xf32>
    %c4_113 = arith.constant 4 : index
    %c2_114 = arith.constant 2 : index
    %c0_115 = arith.constant 0 : index
    %c0_116 = arith.constant 0 : index
    %181 = vector.load %arg1[%c4_113, %c2_114, %c0_115, %c0_116] : memref<8x4x8x32xf32, #tpu.memory_space<vmem>>, vector<1x1x8x32xf32>
    %182 = vector.shape_cast %181 : vector<1x1x8x32xf32> to vector<8x32xf32>
    %cst_117 = arith.constant dense<0.000000e+00> : vector<8x32xf32>
    %183 = tpu.matmul %161, %5, %cst_117 {dimension_numbers = #tpu.dot_dimension_numbers<[1], [0], [0], [1], [0, 0, 1, 1], [], []>} : vector<8x32xf32>, vector<32x32xf32>, vector<8x32xf32> -> vector<8x32xf32>
    %184 = arith.addf %182, %183 : vector<8x32xf32>
    %185 = math.tanh %184 : vector<8x32xf32>
    %c4_118 = arith.constant 4 : index
    %c3_119 = arith.constant 3 : index
    %c0_120 = arith.constant 0 : index
    %c0_121 = arith.constant 0 : index
    %186 = vector.load %arg1[%c4_118, %c3_119, %c0_120, %c0_121] : memref<8x4x8x32xf32, #tpu.memory_space<vmem>>, vector<1x1x8x32xf32>
    %187 = vector.shape_cast %186 : vector<1x1x8x32xf32> to vector<8x32xf32>
    %cst_122 = arith.constant dense<0.000000e+00> : vector<8x32xf32>
    %188 = tpu.matmul %161, %7, %cst_122 {dimension_numbers = #tpu.dot_dimension_numbers<[1], [0], [0], [1], [0, 0, 1, 1], [], []>} : vector<8x32xf32>, vector<32x32xf32>, vector<8x32xf32> -> vector<8x32xf32>
    %189 = arith.addf %187, %188 : vector<8x32xf32>
    %190 = arith.negf %189 : vector<8x32xf32>
    %191 = math.exp %190 : vector<8x32xf32>
    %cst_123 = arith.constant 1.000000e+00 : f32
    %192 = vector.broadcast %cst_123 : f32 to vector<8x32xf32>
    %193 = arith.addf %192, %191 : vector<8x32xf32>
    %194 = arith.divf %192, %193 : vector<8x32xf32>
    %195 = arith.mulf %180, %159 : vector<8x32xf32>
    %196 = arith.mulf %171, %185 : vector<8x32xf32>
    %197 = arith.addf %195, %196 : vector<8x32xf32>
    %198 = math.tanh %197 : vector<8x32xf32>
    %199 = arith.mulf %194, %198 : vector<8x32xf32>
    %200 = arith.addf %162, %199 : vector<8x32xf32>
    %c5 = arith.constant 5 : index
    %c0_124 = arith.constant 0 : index
    %c0_125 = arith.constant 0 : index
    %c0_126 = arith.constant 0 : index
    %201 = vector.load %arg1[%c5, %c0_124, %c0_125, %c0_126] : memref<8x4x8x32xf32, #tpu.memory_space<vmem>>, vector<1x1x8x32xf32>
    %202 = vector.shape_cast %201 : vector<1x1x8x32xf32> to vector<8x32xf32>
    %cst_127 = arith.constant dense<0.000000e+00> : vector<8x32xf32>
    %203 = tpu.matmul %199, %1, %cst_127 {dimension_numbers = #tpu.dot_dimension_numbers<[1], [0], [0], [1], [0, 0, 1, 1], [], []>} : vector<8x32xf32>, vector<32x32xf32>, vector<8x32xf32> -> vector<8x32xf32>
    %204 = arith.addf %202, %203 : vector<8x32xf32>
    %205 = arith.negf %204 : vector<8x32xf32>
    %206 = math.exp %205 : vector<8x32xf32>
    %cst_128 = arith.constant 1.000000e+00 : f32
    %207 = vector.broadcast %cst_128 : f32 to vector<8x32xf32>
    %208 = arith.addf %207, %206 : vector<8x32xf32>
    %209 = arith.divf %207, %208 : vector<8x32xf32>
    %c5_129 = arith.constant 5 : index
    %c1_130 = arith.constant 1 : index
    %c0_131 = arith.constant 0 : index
    %c0_132 = arith.constant 0 : index
    %210 = vector.load %arg1[%c5_129, %c1_130, %c0_131, %c0_132] : memref<8x4x8x32xf32, #tpu.memory_space<vmem>>, vector<1x1x8x32xf32>
    %211 = vector.shape_cast %210 : vector<1x1x8x32xf32> to vector<8x32xf32>
    %cst_133 = arith.constant dense<0.000000e+00> : vector<8x32xf32>
    %212 = tpu.matmul %199, %3, %cst_133 {dimension_numbers = #tpu.dot_dimension_numbers<[1], [0], [0], [1], [0, 0, 1, 1], [], []>} : vector<8x32xf32>, vector<32x32xf32>, vector<8x32xf32> -> vector<8x32xf32>
    %213 = arith.addf %211, %212 : vector<8x32xf32>
    %214 = arith.negf %213 : vector<8x32xf32>
    %215 = math.exp %214 : vector<8x32xf32>
    %cst_134 = arith.constant 1.000000e+00 : f32
    %216 = vector.broadcast %cst_134 : f32 to vector<8x32xf32>
    %217 = arith.addf %216, %215 : vector<8x32xf32>
    %218 = arith.divf %216, %217 : vector<8x32xf32>
    %c5_135 = arith.constant 5 : index
    %c2_136 = arith.constant 2 : index
    %c0_137 = arith.constant 0 : index
    %c0_138 = arith.constant 0 : index
    %219 = vector.load %arg1[%c5_135, %c2_136, %c0_137, %c0_138] : memref<8x4x8x32xf32, #tpu.memory_space<vmem>>, vector<1x1x8x32xf32>
    %220 = vector.shape_cast %219 : vector<1x1x8x32xf32> to vector<8x32xf32>
    %cst_139 = arith.constant dense<0.000000e+00> : vector<8x32xf32>
    %221 = tpu.matmul %199, %5, %cst_139 {dimension_numbers = #tpu.dot_dimension_numbers<[1], [0], [0], [1], [0, 0, 1, 1], [], []>} : vector<8x32xf32>, vector<32x32xf32>, vector<8x32xf32> -> vector<8x32xf32>
    %222 = arith.addf %220, %221 : vector<8x32xf32>
    %223 = math.tanh %222 : vector<8x32xf32>
    %c5_140 = arith.constant 5 : index
    %c3_141 = arith.constant 3 : index
    %c0_142 = arith.constant 0 : index
    %c0_143 = arith.constant 0 : index
    %224 = vector.load %arg1[%c5_140, %c3_141, %c0_142, %c0_143] : memref<8x4x8x32xf32, #tpu.memory_space<vmem>>, vector<1x1x8x32xf32>
    %225 = vector.shape_cast %224 : vector<1x1x8x32xf32> to vector<8x32xf32>
    %cst_144 = arith.constant dense<0.000000e+00> : vector<8x32xf32>
    %226 = tpu.matmul %199, %7, %cst_144 {dimension_numbers = #tpu.dot_dimension_numbers<[1], [0], [0], [1], [0, 0, 1, 1], [], []>} : vector<8x32xf32>, vector<32x32xf32>, vector<8x32xf32> -> vector<8x32xf32>
    %227 = arith.addf %225, %226 : vector<8x32xf32>
    %228 = arith.negf %227 : vector<8x32xf32>
    %229 = math.exp %228 : vector<8x32xf32>
    %cst_145 = arith.constant 1.000000e+00 : f32
    %230 = vector.broadcast %cst_145 : f32 to vector<8x32xf32>
    %231 = arith.addf %230, %229 : vector<8x32xf32>
    %232 = arith.divf %230, %231 : vector<8x32xf32>
    %233 = arith.mulf %218, %197 : vector<8x32xf32>
    %234 = arith.mulf %209, %223 : vector<8x32xf32>
    %235 = arith.addf %233, %234 : vector<8x32xf32>
    %236 = math.tanh %235 : vector<8x32xf32>
    %237 = arith.mulf %232, %236 : vector<8x32xf32>
    %238 = arith.addf %200, %237 : vector<8x32xf32>
    %c6 = arith.constant 6 : index
    %c0_146 = arith.constant 0 : index
    %c0_147 = arith.constant 0 : index
    %c0_148 = arith.constant 0 : index
    %239 = vector.load %arg1[%c6, %c0_146, %c0_147, %c0_148] : memref<8x4x8x32xf32, #tpu.memory_space<vmem>>, vector<1x1x8x32xf32>
    %240 = vector.shape_cast %239 : vector<1x1x8x32xf32> to vector<8x32xf32>
    %cst_149 = arith.constant dense<0.000000e+00> : vector<8x32xf32>
    %241 = tpu.matmul %237, %1, %cst_149 {dimension_numbers = #tpu.dot_dimension_numbers<[1], [0], [0], [1], [0, 0, 1, 1], [], []>} : vector<8x32xf32>, vector<32x32xf32>, vector<8x32xf32> -> vector<8x32xf32>
    %242 = arith.addf %240, %241 : vector<8x32xf32>
    %243 = arith.negf %242 : vector<8x32xf32>
    %244 = math.exp %243 : vector<8x32xf32>
    %cst_150 = arith.constant 1.000000e+00 : f32
    %245 = vector.broadcast %cst_150 : f32 to vector<8x32xf32>
    %246 = arith.addf %245, %244 : vector<8x32xf32>
    %247 = arith.divf %245, %246 : vector<8x32xf32>
    %c6_151 = arith.constant 6 : index
    %c1_152 = arith.constant 1 : index
    %c0_153 = arith.constant 0 : index
    %c0_154 = arith.constant 0 : index
    %248 = vector.load %arg1[%c6_151, %c1_152, %c0_153, %c0_154] : memref<8x4x8x32xf32, #tpu.memory_space<vmem>>, vector<1x1x8x32xf32>
    %249 = vector.shape_cast %248 : vector<1x1x8x32xf32> to vector<8x32xf32>
    %cst_155 = arith.constant dense<0.000000e+00> : vector<8x32xf32>
    %250 = tpu.matmul %237, %3, %cst_155 {dimension_numbers = #tpu.dot_dimension_numbers<[1], [0], [0], [1], [0, 0, 1, 1], [], []>} : vector<8x32xf32>, vector<32x32xf32>, vector<8x32xf32> -> vector<8x32xf32>
    %251 = arith.addf %249, %250 : vector<8x32xf32>
    %252 = arith.negf %251 : vector<8x32xf32>
    %253 = math.exp %252 : vector<8x32xf32>
    %cst_156 = arith.constant 1.000000e+00 : f32
    %254 = vector.broadcast %cst_156 : f32 to vector<8x32xf32>
    %255 = arith.addf %254, %253 : vector<8x32xf32>
    %256 = arith.divf %254, %255 : vector<8x32xf32>
    %c6_157 = arith.constant 6 : index
    %c2_158 = arith.constant 2 : index
    %c0_159 = arith.constant 0 : index
    %c0_160 = arith.constant 0 : index
    %257 = vector.load %arg1[%c6_157, %c2_158, %c0_159, %c0_160] : memref<8x4x8x32xf32, #tpu.memory_space<vmem>>, vector<1x1x8x32xf32>
    %258 = vector.shape_cast %257 : vector<1x1x8x32xf32> to vector<8x32xf32>
    %cst_161 = arith.constant dense<0.000000e+00> : vector<8x32xf32>
    %259 = tpu.matmul %237, %5, %cst_161 {dimension_numbers = #tpu.dot_dimension_numbers<[1], [0], [0], [1], [0, 0, 1, 1], [], []>} : vector<8x32xf32>, vector<32x32xf32>, vector<8x32xf32> -> vector<8x32xf32>
    %260 = arith.addf %258, %259 : vector<8x32xf32>
    %261 = math.tanh %260 : vector<8x32xf32>
    %c6_162 = arith.constant 6 : index
    %c3_163 = arith.constant 3 : index
    %c0_164 = arith.constant 0 : index
    %c0_165 = arith.constant 0 : index
    %262 = vector.load %arg1[%c6_162, %c3_163, %c0_164, %c0_165] : memref<8x4x8x32xf32, #tpu.memory_space<vmem>>, vector<1x1x8x32xf32>
    %263 = vector.shape_cast %262 : vector<1x1x8x32xf32> to vector<8x32xf32>
    %cst_166 = arith.constant dense<0.000000e+00> : vector<8x32xf32>
    %264 = tpu.matmul %237, %7, %cst_166 {dimension_numbers = #tpu.dot_dimension_numbers<[1], [0], [0], [1], [0, 0, 1, 1], [], []>} : vector<8x32xf32>, vector<32x32xf32>, vector<8x32xf32> -> vector<8x32xf32>
    %265 = arith.addf %263, %264 : vector<8x32xf32>
    %266 = arith.negf %265 : vector<8x32xf32>
    %267 = math.exp %266 : vector<8x32xf32>
    %cst_167 = arith.constant 1.000000e+00 : f32
    %268 = vector.broadcast %cst_167 : f32 to vector<8x32xf32>
    %269 = arith.addf %268, %267 : vector<8x32xf32>
    %270 = arith.divf %268, %269 : vector<8x32xf32>
    %271 = arith.mulf %256, %235 : vector<8x32xf32>
    %272 = arith.mulf %247, %261 : vector<8x32xf32>
    %273 = arith.addf %271, %272 : vector<8x32xf32>
    %274 = math.tanh %273 : vector<8x32xf32>
    %275 = arith.mulf %270, %274 : vector<8x32xf32>
    %276 = arith.addf %238, %275 : vector<8x32xf32>
    %c7 = arith.constant 7 : index
    %c0_168 = arith.constant 0 : index
    %c0_169 = arith.constant 0 : index
    %c0_170 = arith.constant 0 : index
    %277 = vector.load %arg1[%c7, %c0_168, %c0_169, %c0_170] : memref<8x4x8x32xf32, #tpu.memory_space<vmem>>, vector<1x1x8x32xf32>
    %278 = vector.shape_cast %277 : vector<1x1x8x32xf32> to vector<8x32xf32>
    %cst_171 = arith.constant dense<0.000000e+00> : vector<8x32xf32>
    %279 = tpu.matmul %275, %1, %cst_171 {dimension_numbers = #tpu.dot_dimension_numbers<[1], [0], [0], [1], [0, 0, 1, 1], [], []>} : vector<8x32xf32>, vector<32x32xf32>, vector<8x32xf32> -> vector<8x32xf32>
    %280 = arith.addf %278, %279 : vector<8x32xf32>
    %281 = arith.negf %280 : vector<8x32xf32>
    %282 = math.exp %281 : vector<8x32xf32>
    %cst_172 = arith.constant 1.000000e+00 : f32
    %283 = vector.broadcast %cst_172 : f32 to vector<8x32xf32>
    %284 = arith.addf %283, %282 : vector<8x32xf32>
    %285 = arith.divf %283, %284 : vector<8x32xf32>
    %c7_173 = arith.constant 7 : index
    %c1_174 = arith.constant 1 : index
    %c0_175 = arith.constant 0 : index
    %c0_176 = arith.constant 0 : index
    %286 = vector.load %arg1[%c7_173, %c1_174, %c0_175, %c0_176] : memref<8x4x8x32xf32, #tpu.memory_space<vmem>>, vector<1x1x8x32xf32>
    %287 = vector.shape_cast %286 : vector<1x1x8x32xf32> to vector<8x32xf32>
    %cst_177 = arith.constant dense<0.000000e+00> : vector<8x32xf32>
    %288 = tpu.matmul %275, %3, %cst_177 {dimension_numbers = #tpu.dot_dimension_numbers<[1], [0], [0], [1], [0, 0, 1, 1], [], []>} : vector<8x32xf32>, vector<32x32xf32>, vector<8x32xf32> -> vector<8x32xf32>
    %289 = arith.addf %287, %288 : vector<8x32xf32>
    %290 = arith.negf %289 : vector<8x32xf32>
    %291 = math.exp %290 : vector<8x32xf32>
    %cst_178 = arith.constant 1.000000e+00 : f32
    %292 = vector.broadcast %cst_178 : f32 to vector<8x32xf32>
    %293 = arith.addf %292, %291 : vector<8x32xf32>
    %294 = arith.divf %292, %293 : vector<8x32xf32>
    %c7_179 = arith.constant 7 : index
    %c2_180 = arith.constant 2 : index
    %c0_181 = arith.constant 0 : index
    %c0_182 = arith.constant 0 : index
    %295 = vector.load %arg1[%c7_179, %c2_180, %c0_181, %c0_182] : memref<8x4x8x32xf32, #tpu.memory_space<vmem>>, vector<1x1x8x32xf32>
    %296 = vector.shape_cast %295 : vector<1x1x8x32xf32> to vector<8x32xf32>
    %cst_183 = arith.constant dense<0.000000e+00> : vector<8x32xf32>
    %297 = tpu.matmul %275, %5, %cst_183 {dimension_numbers = #tpu.dot_dimension_numbers<[1], [0], [0], [1], [0, 0, 1, 1], [], []>} : vector<8x32xf32>, vector<32x32xf32>, vector<8x32xf32> -> vector<8x32xf32>
    %298 = arith.addf %296, %297 : vector<8x32xf32>
    %299 = math.tanh %298 : vector<8x32xf32>
    %c7_184 = arith.constant 7 : index
    %c3_185 = arith.constant 3 : index
    %c0_186 = arith.constant 0 : index
    %c0_187 = arith.constant 0 : index
    %300 = vector.load %arg1[%c7_184, %c3_185, %c0_186, %c0_187] : memref<8x4x8x32xf32, #tpu.memory_space<vmem>>, vector<1x1x8x32xf32>
    %301 = vector.shape_cast %300 : vector<1x1x8x32xf32> to vector<8x32xf32>
    %cst_188 = arith.constant dense<0.000000e+00> : vector<8x32xf32>
    %302 = tpu.matmul %275, %7, %cst_188 {dimension_numbers = #tpu.dot_dimension_numbers<[1], [0], [0], [1], [0, 0, 1, 1], [], []>} : vector<8x32xf32>, vector<32x32xf32>, vector<8x32xf32> -> vector<8x32xf32>
    %303 = arith.addf %301, %302 : vector<8x32xf32>
    %304 = arith.negf %303 : vector<8x32xf32>
    %305 = math.exp %304 : vector<8x32xf32>
    %cst_189 = arith.constant 1.000000e+00 : f32
    %306 = vector.broadcast %cst_189 : f32 to vector<8x32xf32>
    %307 = arith.addf %306, %305 : vector<8x32xf32>
    %308 = arith.divf %306, %307 : vector<8x32xf32>
    %309 = arith.mulf %294, %273 : vector<8x32xf32>
    %310 = arith.mulf %285, %299 : vector<8x32xf32>
    %311 = arith.addf %309, %310 : vector<8x32xf32>
    %312 = math.tanh %311 : vector<8x32xf32>
    %313 = arith.mulf %308, %312 : vector<8x32xf32>
    %314 = arith.addf %276, %313 : vector<8x32xf32>
    %cst_190 = arith.constant 1.250000e-01 : f32
    %315 = vector.broadcast %cst_190 : f32 to vector<8x32xf32>
    %316 = arith.mulf %314, %315 : vector<8x32xf32>
    %c0_191 = arith.constant 0 : index
    %c0_192 = arith.constant 0 : index
    %317 = vector.load %arg3[%c0_191, %c0_192] : memref<8x32xf32, #tpu.memory_space<vmem>>, vector<8x32xf32>
    tpu.vector_store %arg3[%c0_191, %c0_192], %316 {strides = array<i32>} : memref<8x32xf32, #tpu.memory_space<vmem>>, vector<8x32xf32>,
    return
  }
  func.func @transform_0(%arg0: i32) -> (i32, i32, i32, i32) {
    %c0_i32 = arith.constant 0 : i32
    %c0_i32_0 = arith.constant 0 : i32
    %c0_i32_1 = arith.constant 0 : i32
    %c0_i32_2 = arith.constant 0 : i32
    return %c0_i32, %c0_i32_0, %arg0, %c0_i32_1 : i32, i32, i32, i32
  }
  func.func @transform_1(%arg0: i32) -> (i32, i32, i32) {
    %c0_i32 = arith.constant 0 : i32
    %c0_i32_0 = arith.constant 0 : i32
    %c0_i32_1 = arith.constant 0 : i32
    %c0_i32_2 = arith.constant 0 : i32
    return %c0_i32, %c0_i32_0, %c0_i32_1 : i32, i32, i32
  }
  func.func @transform_2(%arg0: i32) -> (i32, i32) {
    %c0_i32 = arith.constant 0 : i32
    %c0_i32_0 = arith.constant 0 : i32
    return %arg0, %c0_i32 : i32, i32
  }
}

</mosaic_0001>

<bundles_post_ra>
// kernel: lstm_mean_pool.1
= control target key start
LH: loop header
LB: loop body
LE: loop exit
PB: predicated region body
PF: predicated region fallthrough
CT: control target
= control target key end

     0   :  { %v3349_v0 = vmov 0.0   ;;  %vm3350_vm0 = vmmov 0   ;;  %vm31_vm1 = vcmask 261120   ;;  %s3987_s1 = inlined_call_operand.vmem [shape: f32[4,32,32], index: 1, kind: input, shape index: {}]   ;;  %s3988_s0 = inlined_call_operand.vmem [shape: f32[8,4,8,32], index: 0, kind: input, shape index: {}]   ;;  %s3989_s2 = inlined_call_operand.vmem [shape: f32[8,32], index: 2, kind: output, shape index: {}]  }
   0x1   :  { %2851 = vmatprep.subr.mxu0 %v3349_v0  ;;  %2862 = vmatprep.subr.mxu1 %v3349_v0  ;;  %v3371_v1 = vld [vmem:[%s3987_s1 + $0x18] sm:$0xff]  ;;  %v3381_v3 = vld [vmem:[%s3987_s1 + $0x10] sm:$0xff]  ;;  %v3395_v5 = vld [vmem:[%s3987_s1 + $0x8] sm:$0xff] }
   0x2   :  { %v3376_v2 = vld [vmem:[%s3987_s1 + $0x38] sm:$0xff]  ;;  %2852 = vmatpush3.msra.mxu0 %v3371_v1  ;;  %v3388_v4 = vld [vmem:[%s3987_s1 + $0x30] sm:$0xff]  ;;  %v3400_v6 = vld [vmem:[%s3987_s1 + $0x28] sm:$0xff]  ;;  %2859 = vmatprep.mubr.msk.f32.mxu0 %vm3350_vm0, %v3349_v0 }
   0x3   :  { %2863 = vmatpush3.msra.mxu1 %v3376_v2  ;;  %2853 = vmatprep.subr.mxu0 %v3349_v0  ;;  %v3409_v7 = vld [vmem:[%s3987_s1] sm:$0xff]  ;;  %v3429_v9 = vld [vmem:[%s3987_s1 + $0x58] sm:$0xff]  ;;  %v3443_v11 = vld [vmem:[%s3987_s1 + $0x50] sm:$0xff] }
   0x4   :  { %2864 = vmatprep.subr.mxu1 %v3349_v0  ;;  %2854 = vmatpush3.msra.mxu0 %v3381_v3  ;;  %v3416_v8 = vld [vmem:[%s3987_s1 + $0x20] sm:$0xff]  ;;  %v3434_v10 = vld [vmem:[%s3987_s1 + $0x78] sm:$0xff]  ;;  %v3448_v12 = vld [vmem:[%s3987_s1 + $0x70] sm:$0xff] }
   0x5   :  { %2865 = vmatpush3.msra.mxu1 %v3388_v4  ;;  %2855 = vmatprep.subr.mxu0 %v3349_v0  ;;  %v3457_v13 = vld [vmem:[%s3987_s1 + $0x48] sm:$0xff]  ;;  %v3471_v15 = vld [vmem:[%s3987_s1 + $0x40] sm:$0xff]  ;;  %v2612_v27 = vld [vmem:[%s3988_s0 + $0x18] sm:$0xff] }
   0x6   :  { %2866 = vmatprep.subr.mxu1 %v3349_v0  ;;  %2856 = vmatpush3.msra.mxu0 %v3395_v5  ;;  %v3462_v14 = vld [vmem:[%s3987_s1 + $0x68] sm:$0xff]  ;;  %v3478_v16 = vld [vmem:[%s3987_s1 + $0x60] sm:$0xff]  ;;  %v2611_v31 = vld [vmem:[%s3988_s0 + $0x10] sm:$0xff] }
   0x7   :  { %2867 = vmatpush3.msra.mxu1 %v3400_v6  ;;  %2857 = vmatprep.subr.mxu0 %v3349_v0  ;;  %v30_v17 = vld [vmem:[%s3988_s0] sm:$0xff]  ;;  %v2609_v18 = vld [vmem:[%s3988_s0 + $0x8] sm:$0xff]  ;;  %v2622_v61 = vld [vmem:[%s3988_s0 + $0x38] sm:$0xff] }
   0x8   :  { %2868 = vmatprep.subr.mxu1 %v3349_v0  ;;  %2858 = vmatpush3.msra.mxu0 %v3409_v7  ;;  %v2614_v51 = vld [vmem:[%s3988_s0 + $0x20] sm:$0xff]  ;;  %v2617_v52 = vld [vmem:[%s3988_s0 + $0x28] sm:$0xff] }
   0x9   :  { %2869 = vmatpush3.msra.mxu1 %v3416_v8  ;;  %2870 = vmatprep.mubr.msk.f32.mxu1 %vm3350_vm0, %v3349_v0 }
   0xa   :  { %2860 = vmatmul.mubr.f32.vlgmr.msra.gmra.mxu0 %v3349_v0  ;;  %2871 = vmatmul.mubr.f32.vlgmr.msra.gmra.mxu1 %v3349_v0 }
   0xb   :  { %2873 = vmatprep.subr.mxu0 %v3349_v0  ;;  %2884 = vmatprep.subr.mxu1 %v3349_v0 }
   0xc   :  { %2874 = vmatpush3.msra.mxu0 %v3429_v9  ;;  %2885 = vmatpush3.msra.mxu1 %v3434_v10 }
   0xd   :  { %2875 = vmatprep.subr.mxu0 %v3349_v0  ;;  %2886 = vmatprep.subr.mxu1 %v3349_v0 }
   0xe   :  { %2876 = vmatpush3.msra.mxu0 %v3443_v11  ;;  %2887 = vmatpush3.msra.mxu1 %v3448_v12 }
   0xf   :  { %2877 = vmatprep.subr.mxu0 %v3349_v0  ;;  %2888 = vmatprep.subr.mxu1 %v3349_v0 }
  0x10   :  { %2878 = vmatpush3.msra.mxu0 %v3457_v13  ;;  %2889 = vmatpush3.msra.mxu1 %v3462_v14 }
  0x11   :  { %2879 = vmatprep.subr.mxu0 %v3349_v0  ;;  %2890 = vmatprep.subr.mxu1 %v3349_v0 }
  0x12   :  { %2880 = vmatpush3.msra.mxu0 %v3471_v15  ;;  %2881 = vmatprep.mubr.msk.f32.mxu0 %vm3350_vm0, %v3349_v0 }
  0x13   :  { %2891 = vmatpush3.msra.mxu1 %v3478_v16  ;;  %2892 = vmatprep.mubr.msk.f32.mxu1 %vm3350_vm0, %v3349_v0 }
  0x14   :  { %2882 = vmatmul.mubr.f32.vlgmr.msra.gmra.mxu0 %v3349_v0  ;;  %2893 = vmatmul.mubr.f32.vlgmr.msra.gmra.mxu1 %v3349_v0 }
  0x15   :  { %2895 = vmatprep.subr.mxu0 %v3349_v0  ;;  %2906 = vmatprep.subr.mxu1 %v3349_v0 }
  0x16   :  { %2896 = vmatpush3.msra.mxu0 %v3371_v1  ;;  %2907 = vmatpush3.msra.mxu1 %v3376_v2 }
  0x17   :  { %2897 = vmatprep.subr.mxu0 %v3349_v0  ;;  %2908 = vmatprep.subr.mxu1 %v3349_v0 }
  0x18   :  { %2898 = vmatpush3.msra.mxu0 %v3381_v3  ;;  %2909 = vmatpush3.msra.mxu1 %v3388_v4 }
  0x19   :  { %2899 = vmatprep.subr.mxu0 %v3349_v0  ;;  %2910 = vmatprep.subr.mxu1 %v3349_v0 }
  0x1a   :  { %2900 = vmatpush3.msra.mxu0 %v3395_v5  ;;  %2911 = vmatpush3.msra.mxu1 %v3400_v6 }
  0x1b   :  { %2901 = vmatprep.subr.mxu0 %v3349_v0  ;;  %2912 = vmatprep.subr.mxu1 %v3349_v0 }
  0x1c   :  { %2902 = vmatpush3.msra.mxu0 %v3409_v7  ;;  %2913 = vmatpush3.msra.mxu1 %v3416_v8 }
  0x1d   :  { %2903 = vmatprep.mubr.msk.f32.mxu0 %vm3350_vm0, %v3349_v0  ;;  %2914 = vmatprep.mubr.msk.f32.mxu1 %vm3350_vm0, %v3349_v0 }
  0x1e   :  { %2917 = vmatprep.subr.mxu0 %v3349_v0  ;;  %2928 = vmatprep.subr.mxu1 %v3349_v0 }
  0xca   :  { %v101_v19 = vpop.f32.mrf.mxu0  ;;  %v180_v20 = vpop.f32.mrf.mxu1 }
  0xcb   :  { %v105_v21 = vadd.f32 %v101_v19, %v30_v17  ;;  %v184_v22 = vadd.f32 %v2609_v18, %v180_v20  ;;  %v2620_v20 = vld [vmem:[%s3988_s0 + $0x30] sm:$0xff] }
  0xcc   :  { %v2861_v23 = vpop.f32.mrf.mxu0  ;;  %v2872_v24 = vpop.f32.mrf.mxu1 }
  0xcd   :  { %v2608_v25 = vmul.f32 -1.442695, %v105_v21  ;;  %v2610_v26 = vmul.f32 -1.442695, %v184_v22 }
  0xcf   :  { %3205 = vpow2.f32 %v2608_v25 }
  0xd0   :  { %3207 = vpow2.f32 %v2610_v26 }
  0xd4   :  { %v259_v28 = vpop.f32.mrf.mxu0  ;;  %v333_v29 = vpop.f32.mrf.mxu1 }
  0xd5   :  { %v337_v30 = vadd.f32 %v2612_v27, %v333_v29  ;;  %v263_v35 = vadd.f32 %v2611_v31, %v259_v28 }
  0xd6   :  { %v2883_v32 = vpop.f32.mrf.mxu0  ;;  %v2894_v33 = vpop.f32.mrf.mxu1 }
  0xd7   :  { %v2613_v34 = vmul.f32 -1.442695, %v337_v30 }
  0xd9   :  { %3209 = vpow2.f32 %v2613_v34 }
  0xda   :  { %3211 = vtanh.f32 %v263_v35 }
  0xdc   :  { %v3206_v36 = vpop.eup %3205 }
  0xdd   :  { %v3208_v37 = vpop.eup %3207  ;;  %v109_v38 = vadd.f32 1.0, %v3206_v36 }
  0xde   :  { %v188_v39 = vadd.f32 1.0, %v3208_v37 }
  0xdf   :  { %3213 = vrcp.f32 %v109_v38  ;;  %v2625_v38 = vld [vmem:[%s3988_s0 + $0x40] sm:$0xff] }
  0xe0   :  { %3215 = vrcp.f32 %v188_v39  ;;  %v2628_v39 = vld [vmem:[%s3988_s0 + $0x48] sm:$0xff] }
  0xe6   :  { %v3210_v40 = vpop.eup %3209 }
  0xe7   :  { %v3212_v41 = vpop.eup %3211  ;;  %v341_v43 = vadd.f32 1.0, %v3210_v40 }
  0xe9   :  { %3217 = vrcp.f32 %v341_v43 }
  0xec   :  { %v3214_v42 = vpop.eup %3213 }
  0xed   :  { %v3216_v44 = vpop.eup %3215  ;;  %v345_v45 = vmul.f32 %v3214_v42, %v3212_v41 }
  0xee   :  { %v344_v46 = vmul.f32 0.0, %v3216_v44 }
  0xf0   :  { %v3524_v47 = vadd.f32 %v345_v45, %v344_v46 }
  0xf2   :  { %3219 = vtanh.f32 %v3524_v47 }
  0xf6   :  { %v3218_v48 = vpop.eup %3217 }
  0xff   :  { %v3220_v49 = vpop.eup %3219 }
 0x100   :  { %v3527_v50 = vmul.f32 %v3220_v49, %v3218_v48  ;;  %v2633_v48 = vld [vmem:[%s3988_s0 + $0x58] sm:$0xff] }
 0x102   :  { %2904 = vmatmul.mubr.msk.f32.vlgmr.msra.gmra.mxu0 %vm31_vm1, %v3527_v50  ;;  %2915 = vmatmul.mubr.msk.f32.vlgmr.msra.gmra.mxu1 %vm31_vm1, %v3527_v50 }
 0x103   :  { %2918 = vmatpush3.msra.mxu0 %v3429_v9  ;;  %2929 = vmatpush3.msra.mxu1 %v3434_v10 }
 0x104   :  { %2919 = vmatprep.subr.mxu0 %v3349_v0  ;;  %2930 = vmatprep.subr.mxu1 %v3349_v0 }
 0x105   :  { %2920 = vmatpush3.msra.mxu0 %v3443_v11  ;;  %2931 = vmatpush3.msra.mxu1 %v3448_v12 }
 0x106   :  { %2921 = vmatprep.subr.mxu0 %v3349_v0  ;;  %2932 = vmatprep.subr.mxu1 %v3349_v0 }
 0x107   :  { %2922 = vmatpush3.msra.mxu0 %v3457_v13  ;;  %2933 = vmatpush3.msra.mxu1 %v3462_v14 }
 0x108   :  { %2923 = vmatprep.subr.mxu0 %v3349_v0  ;;  %2934 = vmatprep.subr.mxu1 %v3349_v0 }
 0x109   :  { %2924 = vmatpush3.msra.mxu0 %v3471_v15  ;;  %2925 = vmatprep.mubr.msk.f32.mxu0 %vm3350_vm0, %v3349_v0 }
 0x10a   :  { %2935 = vmatpush3.msra.mxu1 %v3478_v16  ;;  %2936 = vmatprep.mubr.msk.f32.mxu1 %vm3350_vm0, %v3349_v0 }
 0x10b   :  { %2926 = vmatmul.mubr.msk.f32.vlgmr.msra.gmra.mxu0 %vm31_vm1, %v3527_v50  ;;  %2937 = vmatmul.mubr.msk.f32.vlgmr.msra.gmra.mxu1 %vm31_vm1, %v3527_v50 }
 0x10c   :  { %2939 = vmatprep.subr.mxu0 %v3349_v0  ;;  %2950 = vmatprep.subr.mxu1 %v3349_v0 }
 0x10d   :  { %2940 = vmatpush3.msra.mxu0 %v3371_v1  ;;  %2951 = vmatpush3.msra.mxu1 %v3376_v2 }
 0x10e   :  { %2941 = vmatprep.subr.mxu0 %v3349_v0  ;;  %2952 = vmatprep.subr.mxu1 %v3349_v0 }
 0x10f   :  { %2942 = vmatpush3.msra.mxu0 %v3381_v3  ;;  %2953 = vmatpush3.msra.mxu1 %v3388_v4 }
 0x110   :  { %2943 = vmatprep.subr.mxu0 %v3349_v0  ;;  %2954 = vmatprep.subr.mxu1 %v3349_v0 }
 0x111   :  { %2944 = vmatpush3.msra.mxu0 %v3395_v5  ;;  %2955 = vmatpush3.msra.mxu1 %v3400_v6 }
 0x112   :  { %2945 = vmatprep.subr.mxu0 %v3349_v0  ;;  %2956 = vmatprep.subr.mxu1 %v3349_v0 }
 0x113   :  { %2946 = vmatpush3.msra.mxu0 %v3409_v7  ;;  %2957 = vmatpush3.msra.mxu1 %v3416_v8 }
 0x114   :  { %2947 = vmatprep.mubr.msk.f32.mxu0 %vm3350_vm0, %v3349_v0  ;;  %2958 = vmatprep.mubr.msk.f32.mxu1 %vm3350_vm0, %v3349_v0 }
 0x115   :  { %2961 = vmatprep.subr.mxu0 %v3349_v0  ;;  %2972 = vmatprep.subr.mxu1 %v3349_v0 }
 0x1c2   :  { %v421_v53 = vpop.f32.mrf.mxu0  ;;  %v500_v54 = vpop.f32.mrf.mxu1 }
 0x1c3   :  { %v425_v55 = vadd.f32 %v2614_v51, %v421_v53  ;;  %v504_v56 = vadd.f32 %v2617_v52, %v500_v54 }
 0x1c4   :  { %v2905_v57 = vpop.f32.mrf.mxu0  ;;  %v2916_v58 = vpop.f32.mrf.mxu1 }
 0x1c5   :  { %v2616_v59 = vmul.f32 -1.442695, %v425_v55  ;;  %v2619_v60 = vmul.f32 -1.442695, %v504_v56  ;;  %v2631_v55 = vld [vmem:[%s3988_s0 + $0x50] sm:$0xff] }
 0x1c7   :  { %3221 = vpow2.f32 %v2616_v59 }
 0x1c8   :  { %3223 = vpow2.f32 %v2619_v60 }
 0x1cb   :  { %v579_v62 = vpop.f32.mrf.mxu0  ;;  %v653_v63 = vpop.f32.mrf.mxu1 }
 0x1cc   :  { %v657_v17 = vadd.f32 %v2622_v61, %v653_v63  ;;  %v583_v22 = vadd.f32 %v2620_v20, %v579_v62 }
 0x1cd   :  { %v2927_v18 = vpop.f32.mrf.mxu0  ;;  %v2938_v19 = vpop.f32.mrf.mxu1 }
 0x1ce   :  { %v2624_v21 = vmul.f32 -1.442695, %v657_v17 }
 0x1d0   :  { %3225 = vpow2.f32 %v2624_v21 }
 0x1d1   :  { %3227 = vtanh.f32 %v583_v22 }
 0x1d4   :  { %v3222_v23 = vpop.eup %3221 }
 0x1d5   :  { %v3224_v24 = vpop.eup %3223  ;;  %v429_v25 = vadd.f32 1.0, %v3222_v23 }
 0x1d6   :  { %v508_v26 = vadd.f32 1.0, %v3224_v24 }
 0x1d7   :  { %3229 = vrcp.f32 %v429_v25 }
 0x1d8   :  { %3231 = vrcp.f32 %v508_v26 }
 0x1dd   :  { %v3226_v27 = vpop.eup %3225 }
 0x1de   :  { %v3228_v28 = vpop.eup %3227  ;;  %v661_v32 = vadd.f32 1.0, %v3226_v27 }
 0x1e0   :  { %3233 = vrcp.f32 %v661_v32 }
 0x1e4   :  { %v3230_v29 = vpop.eup %3229 }
 0x1e5   :  { %v3232_v30 = vpop.eup %3231  ;;  %v665_v31 = vmul.f32 %v3230_v29, %v3228_v28  ;;  %v2639_v28 = vld [vmem:[%s3988_s0 + $0x68] sm:$0xff] }
 0x1e6   :  { %v664_v33 = vmul.f32 %v3232_v30, %v3524_v47 }
 0x1e8   :  { %v3590_v34 = vadd.f32 %v665_v31, %v664_v33 }
 0x1ea   :  { %3235 = vtanh.f32 %v3590_v34 }
 0x1ed   :  { %v3234_v35 = vpop.eup %3233 }
 0x1f7   :  { %v3236_v36 = vpop.eup %3235 }
 0x1f8   :  { %v3593_v37 = vmul.f32 %v3236_v36, %v3234_v35 }
 0x1fa   :  { %2948 = vmatmul.mubr.msk.f32.vlgmr.msra.gmra.mxu0 %vm31_vm1, %v3593_v37  ;;  %2959 = vmatmul.mubr.msk.f32.vlgmr.msra.gmra.mxu1 %vm31_vm1, %v3593_v37  ;;  %v669_v25 = vadd.f32 %v3593_v37, %v3527_v50  ;;  %v2636_v50 = vld [vmem:[%s3988_s0 + $0x60] sm:$0xff] }
 0x1fb   :  { %2962 = vmatpush3.msra.mxu0 %v3429_v9  ;;  %2973 = vmatpush3.msra.mxu1 %v3434_v10 }
 0x1fc   :  { %2963 = vmatprep.subr.mxu0 %v3349_v0  ;;  %2974 = vmatprep.subr.mxu1 %v3349_v0 }
 0x1fd   :  { %2964 = vmatpush3.msra.mxu0 %v3443_v11  ;;  %2975 = vmatpush3.msra.mxu1 %v3448_v12 }
 0x1fe   :  { %2965 = vmatprep.subr.mxu0 %v3349_v0  ;;  %2976 = vmatprep.subr.mxu1 %v3349_v0 }
 0x1ff   :  { %2966 = vmatpush3.msra.mxu0 %v3457_v13  ;;  %2977 = vmatpush3.msra.mxu1 %v3462_v14 }
 0x200   :  { %2967 = vmatprep.subr.mxu0 %v3349_v0  ;;  %2978 = vmatprep.subr.mxu1 %v3349_v0 }
 0x201   :  { %2968 = vmatpush3.msra.mxu0 %v3471_v15  ;;  %2969 = vmatprep.mubr.msk.f32.mxu0 %vm3350_vm0, %v3349_v0 }
 0x202   :  { %2979 = vmatpush3.msra.mxu1 %v3478_v16  ;;  %2980 = vmatprep.mubr.msk.f32.mxu1 %vm3350_vm0, %v3349_v0 }
 0x203   :  { %2970 = vmatmul.mubr.msk.f32.vlgmr.msra.gmra.mxu0 %vm31_vm1, %v3593_v37  ;;  %2981 = vmatmul.mubr.msk.f32.vlgmr.msra.gmra.mxu1 %vm31_vm1, %v3593_v37  ;;  %v2644_v37 = vld [vmem:[%s3988_s0 + $0x78] sm:$0xff] }
 0x204   :  { %2983 = vmatprep.subr.mxu0 %v3349_v0  ;;  %2994 = vmatprep.subr.mxu1 %v3349_v0 }
 0x205   :  { %2984 = vmatpush3.msra.mxu0 %v3371_v1  ;;  %2995 = vmatpush3.msra.mxu1 %v3376_v2 }
 0x206   :  { %2985 = vmatprep.subr.mxu0 %v3349_v0  ;;  %2996 = vmatprep.subr.mxu1 %v3349_v0 }
 0x207   :  { %2986 = vmatpush3.msra.mxu0 %v3381_v3  ;;  %2997 = vmatpush3.msra.mxu1 %v3388_v4 }
 0x208   :  { %2987 = vmatprep.subr.mxu0 %v3349_v0  ;;  %2998 = vmatprep.subr.mxu1 %v3349_v0 }
 0x209   :  { %2988 = vmatpush3.msra.mxu0 %v3395_v5  ;;  %2999 = vmatpush3.msra.mxu1 %v3400_v6 }
 0x20a   :  { %2989 = vmatprep.subr.mxu0 %v3349_v0  ;;  %3000 = vmatprep.subr.mxu1 %v3349_v0 }
 0x20b   :  { %2990 = vmatpush3.msra.mxu0 %v3409_v7  ;;  %3001 = vmatpush3.msra.mxu1 %v3416_v8 }
 0x20c   :  { %2991 = vmatprep.mubr.msk.f32.mxu0 %vm3350_vm0, %v3349_v0  ;;  %3002 = vmatprep.mubr.msk.f32.mxu1 %vm3350_vm0, %v3349_v0 }
 0x20d   :  { %3005 = vmatprep.subr.mxu0 %v3349_v0  ;;  %3016 = vmatprep.subr.mxu1 %v3349_v0 }
 0x2ba   :  { %v741_v40 = vpop.f32.mrf.mxu0  ;;  %v820_v41 = vpop.f32.mrf.mxu1 }
 0x2bb   :  { %v745_v42 = vadd.f32 %v2625_v38, %v741_v40  ;;  %v824_v43 = vadd.f32 %v2628_v39, %v820_v41 }
 0x2bc   :  { %v2949_v44 = vpop.f32.mrf.mxu0  ;;  %v2960_v45 = vpop.f32.mrf.mxu1 }
 0x2bd   :  { %v2627_v46 = vmul.f32 -1.442695, %v745_v42  ;;  %v2630_v47 = vmul.f32 -1.442695, %v824_v43  ;;  %v2642_v43 = vld [vmem:[%s3988_s0 + $0x70] sm:$0xff] }
 0x2bf   :  { %3237 = vpow2.f32 %v2627_v46 }
 0x2c0   :  { %3239 = vpow2.f32 %v2630_v47 }
 0x2c3   :  { %v899_v49 = vpop.f32.mrf.mxu0  ;;  %v973_v51 = vpop.f32.mrf.mxu1 }
 0x2c4   :  { %v977_v52 = vadd.f32 %v2633_v48, %v973_v51  ;;  %v903_v57 = vadd.f32 %v2631_v55, %v899_v49 }
 0x2c5   :  { %v2971_v53 = vpop.f32.mrf.mxu0  ;;  %v2982_v54 = vpop.f32.mrf.mxu1 }
 0x2c6   :  { %v2635_v56 = vmul.f32 -1.442695, %v977_v52 }
 0x2c8   :  { %3241 = vpow2.f32 %v2635_v56 }
 0x2c9   :  { %3243 = vtanh.f32 %v903_v57 }
 0x2cc   :  { %v3238_v58 = vpop.eup %3237 }
 0x2cd   :  { %v3240_v59 = vpop.eup %3239  ;;  %v749_v60 = vadd.f32 1.0, %v3238_v58 }
 0x2ce   :  { %v828_v61 = vadd.f32 1.0, %v3240_v59 }
 0x2cf   :  { %3245 = vrcp.f32 %v749_v60 }
 0x2d0   :  { %3247 = vrcp.f32 %v828_v61 }
 0x2d5   :  { %v3242_v62 = vpop.eup %3241 }
 0x2d6   :  { %v3244_v63 = vpop.eup %3243  ;;  %v981_v20 = vadd.f32 1.0, %v3242_v62 }
 0x2d8   :  { %3249 = vrcp.f32 %v981_v20 }
 0x2dc   :  { %v3246_v17 = vpop.eup %3245 }
 0x2dd   :  { %v3248_v18 = vpop.eup %3247  ;;  %v985_v19 = vmul.f32 %v3246_v17, %v3244_v63  ;;  %v2647_v63 = vld [vmem:[%s3988_s0 + $0x80] sm:$0xff]  ;;  %v2650_v17 = vld [vmem:[%s3988_s0 + $0x88] sm:$0xff] }
 0x2de   :  { %v984_v21 = vmul.f32 %v3248_v18, %v3590_v34 }
 0x2e0   :  { %v3656_v22 = vadd.f32 %v985_v19, %v984_v21 }
 0x2e2   :  { %3251 = vtanh.f32 %v3656_v22 }
 0x2e5   :  { %v3250_v23 = vpop.eup %3249 }
 0x2ef   :  { %v3252_v24 = vpop.eup %3251 }
 0x2f0   :  { %v988_v26 = vmul.f32 %v3252_v24, %v3250_v23 }
 0x2f2   :  { %v3661_v27 = vadd.f32 %v988_v26, %v669_v25  ;;  %2992 = vmatmul.mubr.msk.f32.vlgmr.msra.gmra.mxu0 %vm31_vm1, %v988_v26  ;;  %3003 = vmatmul.mubr.msk.f32.vlgmr.msra.gmra.mxu1 %vm31_vm1, %v988_v26 }
 0x2f3   :  { %3006 = vmatpush3.msra.mxu0 %v3429_v9  ;;  %3017 = vmatpush3.msra.mxu1 %v3434_v10 }
 0x2f4   :  { %3007 = vmatprep.subr.mxu0 %v3349_v0  ;;  %3018 = vmatprep.subr.mxu1 %v3349_v0 }
 0x2f5   :  { %3008 = vmatpush3.msra.mxu0 %v3443_v11  ;;  %3019 = vmatpush3.msra.mxu1 %v3448_v12 }
 0x2f6   :  { %3009 = vmatprep.subr.mxu0 %v3349_v0  ;;  %3020 = vmatprep.subr.mxu1 %v3349_v0 }
 0x2f7   :  { %3010 = vmatpush3.msra.mxu0 %v3457_v13  ;;  %3021 = vmatpush3.msra.mxu1 %v3462_v14 }
 0x2f8   :  { %3011 = vmatprep.subr.mxu0 %v3349_v0  ;;  %3022 = vmatprep.subr.mxu1 %v3349_v0 }
 0x2f9   :  { %3012 = vmatpush3.msra.mxu0 %v3471_v15  ;;  %3013 = vmatprep.mubr.msk.f32.mxu0 %vm3350_vm0, %v3349_v0 }
 0x2fa   :  { %3023 = vmatpush3.msra.mxu1 %v3478_v16  ;;  %3024 = vmatprep.mubr.msk.f32.mxu1 %vm3350_vm0, %v3349_v0 }
 0x2fb   :  { %3014 = vmatmul.mubr.msk.f32.vlgmr.msra.gmra.mxu0 %vm31_vm1, %v988_v26  ;;  %3025 = vmatmul.mubr.msk.f32.vlgmr.msra.gmra.mxu1 %vm31_vm1, %v988_v26  ;;  %v2655_v26 = vld [vmem:[%s3988_s0 + $0x98] sm:$0xff] }
 0x2fc   :  { %3027 = vmatprep.subr.mxu0 %v3349_v0  ;;  %3038 = vmatprep.subr.mxu1 %v3349_v0 }
 0x2fd   :  { %3028 = vmatpush3.msra.mxu0 %v3371_v1  ;;  %3039 = vmatpush3.msra.mxu1 %v3376_v2 }
 0x2fe   :  { %3029 = vmatprep.subr.mxu0 %v3349_v0  ;;  %3040 = vmatprep.subr.mxu1 %v3349_v0 }
 0x2ff   :  { %3030 = vmatpush3.msra.mxu0 %v3381_v3  ;;  %3041 = vmatpush3.msra.mxu1 %v3388_v4 }
 0x300   :  { %3031 = vmatprep.subr.mxu0 %v3349_v0  ;;  %3042 = vmatprep.subr.mxu1 %v3349_v0 }
 0x301   :  { %3032 = vmatpush3.msra.mxu0 %v3395_v5  ;;  %3043 = vmatpush3.msra.mxu1 %v3400_v6 }
 0x302   :  { %3033 = vmatprep.subr.mxu0 %v3349_v0  ;;  %3044 = vmatprep.subr.mxu1 %v3349_v0 }
 0x303   :  { %3034 = vmatpush3.msra.mxu0 %v3409_v7  ;;  %3045 = vmatpush3.msra.mxu1 %v3416_v8 }
 0x304   :  { %3035 = vmatprep.mubr.msk.f32.mxu0 %vm3350_vm0, %v3349_v0  ;;  %3046 = vmatprep.mubr.msk.f32.mxu1 %vm3350_vm0, %v3349_v0 }
 0x305   :  { %3049 = vmatprep.subr.mxu0 %v3349_v0  ;;  %3060 = vmatprep.subr.mxu1 %v3349_v0 }
 0x3b2   :  { %v1061_v29 = vpop.f32.mrf.mxu0  ;;  %v1140_v30 = vpop.f32.mrf.mxu1 }
 0x3b3   :  { %v1065_v31 = vadd.f32 %v2636_v50, %v1061_v29  ;;  %v1144_v32 = vadd.f32 %v2639_v28, %v1140_v30 }
 0x3b4   :  { %v2993_v33 = vpop.f32.mrf.mxu0  ;;  %v3004_v34 = vpop.f32.mrf.mxu1 }
 0x3b5   :  { %v2638_v35 = vmul.f32 -1.442695, %v1065_v31  ;;  %v2641_v36 = vmul.f32 -1.442695, %v1144_v32  ;;  %v2653_v31 = vld [vmem:[%s3988_s0 + $0x90] sm:$0xff] }
 0x3b7   :  { %3253 = vpow2.f32 %v2638_v35 }
 0x3b8   :  { %3255 = vpow2.f32 %v2641_v36 }
 0x3bb   :  { %v1219_v38 = vpop.f32.mrf.mxu0  ;;  %v1293_v39 = vpop.f32.mrf.mxu1 }
 0x3bc   :  { %v1297_v40 = vadd.f32 %v2644_v37, %v1293_v39  ;;  %v1223_v45 = vadd.f32 %v2642_v43, %v1219_v38 }
 0x3bd   :  { %v3015_v41 = vpop.f32.mrf.mxu0  ;;  %v3026_v42 = vpop.f32.mrf.mxu1 }
 0x3be   :  { %v2646_v44 = vmul.f32 -1.442695, %v1297_v40 }
 0x3c0   :  { %3257 = vpow2.f32 %v2646_v44 }
 0x3c1   :  { %3259 = vtanh.f32 %v1223_v45 }
 0x3c4   :  { %v3254_v46 = vpop.eup %3253 }
 0x3c5   :  { %v3256_v47 = vpop.eup %3255  ;;  %v1069_v48 = vadd.f32 1.0, %v3254_v46 }
 0x3c6   :  { %v1148_v49 = vadd.f32 1.0, %v3256_v47 }
 0x3c7   :  { %3261 = vrcp.f32 %v1069_v48 }
 0x3c8   :  { %3263 = vrcp.f32 %v1148_v49 }
 0x3cd   :  { %v3258_v51 = vpop.eup %3257 }
 0x3ce   :  { %v3260_v52 = vpop.eup %3259  ;;  %v1301_v56 = vadd.f32 1.0, %v3258_v51 }
 0x3d0   :  { %3265 = vrcp.f32 %v1301_v56 }
 0x3d4   :  { %v3262_v53 = vpop.eup %3261 }
 0x3d5   :  { %v3264_v54 = vpop.eup %3263  ;;  %v1305_v55 = vmul.f32 %v3262_v53, %v3260_v52  ;;  %v2666_v53 = vld [vmem:[%s3988_s0 + $0xb8] sm:$0xff] }
 0x3d6   :  { %v1304_v57 = vmul.f32 %v3264_v54, %v3656_v22 }
 0x3d8   :  { %v3720_v58 = vadd.f32 %v1305_v55, %v1304_v57 }
 0x3da   :  { %3267 = vtanh.f32 %v3720_v58 }
 0x3dd   :  { %v3266_v59 = vpop.eup %3265 }
 0x3e7   :  { %v3268_v60 = vpop.eup %3267 }
 0x3e8   :  { %v1308_v61 = vmul.f32 %v3268_v60, %v3266_v59  ;;  %v2664_v59 = vld [vmem:[%s3988_s0 + $0xb0] sm:$0xff] }
 0x3ea   :  { %v3724_v62 = vadd.f32 %v1308_v61, %v3661_v27  ;;  %3036 = vmatmul.mubr.msk.f32.vlgmr.msra.gmra.mxu0 %vm31_vm1, %v1308_v61  ;;  %3047 = vmatmul.mubr.msk.f32.vlgmr.msra.gmra.mxu1 %vm31_vm1, %v1308_v61 }
 0x3eb   :  { %3050 = vmatpush3.msra.mxu0 %v3429_v9  ;;  %3061 = vmatpush3.msra.mxu1 %v3434_v10 }
 0x3ec   :  { %3051 = vmatprep.subr.mxu0 %v3349_v0  ;;  %3062 = vmatprep.subr.mxu1 %v3349_v0 }
 0x3ed   :  { %3052 = vmatpush3.msra.mxu0 %v3443_v11  ;;  %3063 = vmatpush3.msra.mxu1 %v3448_v12 }
 0x3ee   :  { %3053 = vmatprep.subr.mxu0 %v3349_v0  ;;  %3064 = vmatprep.subr.mxu1 %v3349_v0 }
 0x3ef   :  { %3054 = vmatpush3.msra.mxu0 %v3457_v13  ;;  %3065 = vmatpush3.msra.mxu1 %v3462_v14 }
 0x3f0   :  { %3055 = vmatprep.subr.mxu0 %v3349_v0  ;;  %3066 = vmatprep.subr.mxu1 %v3349_v0 }
 0x3f1   :  { %3056 = vmatpush3.msra.mxu0 %v3471_v15  ;;  %3057 = vmatprep.mubr.msk.f32.mxu0 %vm3350_vm0, %v3349_v0 }
 0x3f2   :  { %3067 = vmatpush3.msra.mxu1 %v3478_v16  ;;  %3068 = vmatprep.mubr.msk.f32.mxu1 %vm3350_vm0, %v3349_v0 }
 0x3f3   :  { %3058 = vmatmul.mubr.msk.f32.vlgmr.msra.gmra.mxu0 %vm31_vm1, %v1308_v61  ;;  %3069 = vmatmul.mubr.msk.f32.vlgmr.msra.gmra.mxu1 %vm31_vm1, %v1308_v61 }
 0x3f4   :  { %3071 = vmatprep.subr.mxu0 %v3349_v0  ;;  %3082 = vmatprep.subr.mxu1 %v3349_v0 }
 0x3f5   :  { %3072 = vmatpush3.msra.mxu0 %v3371_v1  ;;  %3083 = vmatpush3.msra.mxu1 %v3376_v2 }
 0x3f6   :  { %3073 = vmatprep.subr.mxu0 %v3349_v0  ;;  %3084 = vmatprep.subr.mxu1 %v3349_v0 }
 0x3f7   :  { %3074 = vmatpush3.msra.mxu0 %v3381_v3  ;;  %3085 = vmatpush3.msra.mxu1 %v3388_v4 }
 0x3f8   :  { %3075 = vmatprep.subr.mxu0 %v3349_v0  ;;  %3086 = vmatprep.subr.mxu1 %v3349_v0 }
 0x3f9   :  { %3076 = vmatpush3.msra.mxu0 %v3395_v5  ;;  %3087 = vmatpush3.msra.mxu1 %v3400_v6 }
 0x3fa   :  { %3077 = vmatprep.subr.mxu0 %v3349_v0  ;;  %3088 = vmatprep.subr.mxu1 %v3349_v0 }
 0x3fb   :  { %3078 = vmatpush3.msra.mxu0 %v3409_v7  ;;  %3089 = vmatpush3.msra.mxu1 %v3416_v8 }
 0x3fc   :  { %3079 = vmatprep.mubr.msk.f32.mxu0 %vm3350_vm0, %v3349_v0  ;;  %3090 = vmatprep.mubr.msk.f32.mxu1 %vm3350_vm0, %v3349_v0 }
 0x3fd   :  { %3093 = vmatprep.subr.mxu0 %v3349_v0  ;;  %3104 = vmatprep.subr.mxu1 %v3349_v0 }
 0x4aa   :  { %v1381_v18 = vpop.f32.mrf.mxu0  ;;  %v1460_v19 = vpop.f32.mrf.mxu1 }
 0x4ab   :  { %v1385_v20 = vadd.f32 %v2647_v63, %v1381_v18  ;;  %v1464_v21 = vadd.f32 %v2650_v17, %v1460_v19 }
 0x4ac   :  { %v3037_v22 = vpop.f32.mrf.mxu0  ;;  %v3048_v23 = vpop.f32.mrf.mxu1 }
 0x4ad   :  { %v2649_v24 = vmul.f32 -1.442695, %v1385_v20  ;;  %v2652_v25 = vmul.f32 -1.442695, %v1464_v21 }
 0x4af   :  { %3269 = vpow2.f32 %v2649_v24 }
 0x4b0   :  { %3271 = vpow2.f32 %v2652_v25 }
 0x4b3   :  { %v1539_v27 = vpop.f32.mrf.mxu0  ;;  %v1613_v50 = vpop.f32.mrf.mxu1 }
 0x4b4   :  { %v1617_v28 = vadd.f32 %v2655_v26, %v1613_v50  ;;  %v1543_v33 = vadd.f32 %v2653_v31, %v1539_v27  ;;  %v2672_v31 = vld [vmem:[%s3988_s0 + $0xc8] sm:$0xff] }
 0x4b5   :  { %v3059_v29 = vpop.f32.mrf.mxu0  ;;  %v3070_v30 = vpop.f32.mrf.mxu1 }
 0x4b6   :  { %v2657_v32 = vmul.f32 -1.442695, %v1617_v28  ;;  %v2669_v30 = vld [vmem:[%s3988_s0 + $0xc0] sm:$0xff] }
 0x4b8   :  { %3273 = vpow2.f32 %v2657_v32 }
 0x4b9   :  { %3275 = vtanh.f32 %v1543_v33 }
 0x4bc   :  { %v3270_v34 = vpop.eup %3269 }
 0x4bd   :  { %v3272_v35 = vpop.eup %3271  ;;  %v1389_v36 = vadd.f32 1.0, %v3270_v34 }
 0x4be   :  { %v1468_v37 = vadd.f32 1.0, %v3272_v35 }
 0x4bf   :  { %3277 = vrcp.f32 %v1389_v36 }
 0x4c0   :  { %3279 = vrcp.f32 %v1468_v37 }
 0x4c5   :  { %v3274_v38 = vpop.eup %3273 }
 0x4c6   :  { %v3276_v39 = vpop.eup %3275  ;;  %v1621_v43 = vadd.f32 1.0, %v3274_v38 }
 0x4c8   :  { %3281 = vrcp.f32 %v1621_v43 }
 0x4cc   :  { %v3278_v40 = vpop.eup %3277 }
 0x4cd   :  { %v3280_v41 = vpop.eup %3279  ;;  %v1625_v42 = vmul.f32 %v3278_v40, %v3276_v39  ;;  %v2677_v40 = vld [vmem:[%s3988_s0 + $0xd8] sm:$0xff] }
 0x4ce   :  { %v1624_v44 = vmul.f32 %v3280_v41, %v3720_v58 }
 0x4d0   :  { %v3783_v45 = vadd.f32 %v1625_v42, %v1624_v44 }
 0x4d2   :  { %3283 = vtanh.f32 %v3783_v45 }
 0x4d5   :  { %v3282_v46 = vpop.eup %3281 }
 0x4df   :  { %v3284_v47 = vpop.eup %3283 }
 0x4e0   :  { %v1628_v48 = vmul.f32 %v3284_v47, %v3282_v46  ;;  %v2675_v46 = vld [vmem:[%s3988_s0 + $0xd0] sm:$0xff] }
 0x4e2   :  { %v3787_v49 = vadd.f32 %v1628_v48, %v3724_v62  ;;  %3080 = vmatmul.mubr.msk.f32.vlgmr.msra.gmra.mxu0 %vm31_vm1, %v1628_v48  ;;  %3091 = vmatmul.mubr.msk.f32.vlgmr.msra.gmra.mxu1 %vm31_vm1, %v1628_v48 }
 0x4e3   :  { %3094 = vmatpush3.msra.mxu0 %v3429_v9  ;;  %3105 = vmatpush3.msra.mxu1 %v3434_v10 }
 0x4e4   :  { %3095 = vmatprep.subr.mxu0 %v3349_v0  ;;  %3106 = vmatprep.subr.mxu1 %v3349_v0 }
 0x4e5   :  { %3096 = vmatpush3.msra.mxu0 %v3443_v11  ;;  %3107 = vmatpush3.msra.mxu1 %v3448_v12 }
 0x4e6   :  { %3097 = vmatprep.subr.mxu0 %v3349_v0  ;;  %3108 = vmatprep.subr.mxu1 %v3349_v0 }
 0x4e7   :  { %3098 = vmatpush3.msra.mxu0 %v3457_v13  ;;  %3109 = vmatpush3.msra.mxu1 %v3462_v14 }
 0x4e8   :  { %3099 = vmatprep.subr.mxu0 %v3349_v0  ;;  %3110 = vmatprep.subr.mxu1 %v3349_v0 }
 0x4e9   :  { %3100 = vmatpush3.msra.mxu0 %v3471_v15  ;;  %3101 = vmatprep.mubr.msk.f32.mxu0 %vm3350_vm0, %v3349_v0 }
 0x4ea   :  { %3111 = vmatpush3.msra.mxu1 %v3478_v16  ;;  %3112 = vmatprep.mubr.msk.f32.mxu1 %vm3350_vm0, %v3349_v0 }
 0x4eb   :  { %3102 = vmatmul.mubr.msk.f32.vlgmr.msra.gmra.mxu0 %vm31_vm1, %v1628_v48  ;;  %3113 = vmatmul.mubr.msk.f32.vlgmr.msra.gmra.mxu1 %vm31_vm1, %v1628_v48 }
 0x4ec   :  { %3115 = vmatprep.subr.mxu0 %v3349_v0  ;;  %3126 = vmatprep.subr.mxu1 %v3349_v0 }
 0x4ed   :  { %3116 = vmatpush3.msra.mxu0 %v3371_v1  ;;  %3127 = vmatpush3.msra.mxu1 %v3376_v2  ;;  %v2658_v1 = vld [vmem:[%s3988_s0 + $0xa0] sm:$0xff]  ;;  %v2661_v2 = vld [vmem:[%s3988_s0 + $0xa8] sm:$0xff] }
 0x4ee   :  { %3117 = vmatprep.subr.mxu0 %v3349_v0  ;;  %3128 = vmatprep.subr.mxu1 %v3349_v0 }
 0x4ef   :  { %3118 = vmatpush3.msra.mxu0 %v3381_v3  ;;  %3129 = vmatpush3.msra.mxu1 %v3388_v4 }
 0x4f0   :  { %3119 = vmatprep.subr.mxu0 %v3349_v0  ;;  %3130 = vmatprep.subr.mxu1 %v3349_v0 }
 0x4f1   :  { %3120 = vmatpush3.msra.mxu0 %v3395_v5  ;;  %3131 = vmatpush3.msra.mxu1 %v3400_v6 }
 0x4f2   :  { %3121 = vmatprep.subr.mxu0 %v3349_v0  ;;  %3132 = vmatprep.subr.mxu1 %v3349_v0 }
 0x4f3   :  { %3122 = vmatpush3.msra.mxu0 %v3409_v7  ;;  %3133 = vmatpush3.msra.mxu1 %v3416_v8 }
 0x4f4   :  { %3123 = vmatprep.mubr.msk.f32.mxu0 %vm3350_vm0, %v3349_v0  ;;  %3134 = vmatprep.mubr.msk.f32.mxu1 %vm3350_vm0, %v3349_v0 }
 0x4f5   :  { %3137 = vmatprep.subr.mxu0 %v3349_v0  ;;  %3148 = vmatprep.subr.mxu1 %v3349_v0 }
 0x5a2   :  { %v1701_v3 = vpop.f32.mrf.mxu0  ;;  %v1780_v4 = vpop.f32.mrf.mxu1 }
 0x5a3   :  { %v1705_v5 = vadd.f32 %v2658_v1, %v1701_v3  ;;  %v1784_v6 = vadd.f32 %v2661_v2, %v1780_v4 }
 0x5a4   :  { %v3081_v7 = vpop.f32.mrf.mxu0  ;;  %v3092_v8 = vpop.f32.mrf.mxu1 }
 0x5a5   :  { %v2660_v51 = vmul.f32 -1.442695, %v1705_v5  ;;  %v2663_v52 = vmul.f32 -1.442695, %v1784_v6 }
 0x5a7   :  { %3285 = vpow2.f32 %v2660_v51 }
 0x5a8   :  { %3287 = vpow2.f32 %v2663_v52 }
 0x5ab   :  { %v1859_v54 = vpop.f32.mrf.mxu0  ;;  %v1933_v55 = vpop.f32.mrf.mxu1 }
 0x5ac   :  { %v1937_v56 = vadd.f32 %v2666_v53, %v1933_v55  ;;  %v1863_v61 = vadd.f32 %v2664_v59, %v1859_v54  ;;  %v3342_v59 = vld [vmem:[%s3987_s1 + $0x78] sm:$0xff] }
 0x5ad   :  { %v3103_v57 = vpop.f32.mrf.mxu0  ;;  %v3114_v58 = vpop.f32.mrf.mxu1 }
 0x5ae   :  { %v2668_v60 = vmul.f32 -1.442695, %v1937_v56  ;;  %v3341_v58 = vld [vmem:[%s3987_s1 + $0x58] sm:$0xff] }
 0x5b0   :  { %3289 = vpow2.f32 %v2668_v60  ;;  %v3343_v60 = vld [vmem:[%s3987_s1 + $0x50] sm:$0xff] }
 0x5b1   :  { %3291 = vtanh.f32 %v1863_v61  ;;  %v3344_v61 = vld [vmem:[%s3987_s1 + $0x70] sm:$0xff] }
 0x5b4   :  { %v3286_v62 = vpop.eup %3285 }
 0x5b5   :  { %v3288_v63 = vpop.eup %3287  ;;  %v1709_v17 = vadd.f32 1.0, %v3286_v62  ;;  %v3345_v62 = vld [vmem:[%s3987_s1 + $0x48] sm:$0xff] }
 0x5b6   :  { %v1788_v18 = vadd.f32 1.0, %v3288_v63  ;;  %v3346_v63 = vld [vmem:[%s3987_s1 + $0x68] sm:$0xff] }
 0x5b7   :  { %3293 = vrcp.f32 %v1709_v17  ;;  %v3347_v17 = vld [vmem:[%s3987_s1 + $0x40] sm:$0xff] }
 0x5b8   :  { %3295 = vrcp.f32 %v1788_v18  ;;  %v3348_v18 = vld [vmem:[%s3987_s1 + $0x60] sm:$0xff] }
 0x5bd   :  { %v3290_v19 = vpop.eup %3289 }
 0x5be   :  { %v3292_v20 = vpop.eup %3291  ;;  %v1941_v24 = vadd.f32 1.0, %v3290_v19  ;;  %v2680_v19 = vld [vmem:[%s3988_s0 + $0xe0] sm:$0xff] }
 0x5c0   :  { %3297 = vrcp.f32 %v1941_v24 }
 0x5c4   :  { %v3294_v21 = vpop.eup %3293 }
 0x5c5   :  { %v3296_v22 = vpop.eup %3295  ;;  %v1945_v23 = vmul.f32 %v3294_v21, %v3292_v20  ;;  %v2683_v20 = vld [vmem:[%s3988_s0 + $0xe8] sm:$0xff] }
 0x5c6   :  { %v1944_v25 = vmul.f32 %v3296_v22, %v3783_v45 }
 0x5c8   :  { %v3846_v26 = vadd.f32 %v1945_v23, %v1944_v25 }
 0x5ca   :  { %3299 = vtanh.f32 %v3846_v26 }
 0x5cd   :  { %v3298_v27 = vpop.eup %3297 }
 0x5d7   :  { %v3300_v50 = vpop.eup %3299 }
 0x5d8   :  { %v1948_v28 = vmul.f32 %v3300_v50, %v3298_v27  ;;  %v2688_v50 = vld [vmem:[%s3988_s0 + $0xf8] sm:$0xff] }
 0x5da   :  { %v3850_v29 = vadd.f32 %v1948_v28, %v3787_v49  ;;  %3124 = vmatmul.mubr.msk.f32.vlgmr.msra.gmra.mxu0 %vm31_vm1, %v1948_v28  ;;  %3135 = vmatmul.mubr.msk.f32.vlgmr.msra.gmra.mxu1 %vm31_vm1, %v1948_v28 }
 0x5db   :  { %3138 = vmatpush3.msra.mxu0 %v3429_v9  ;;  %3149 = vmatpush3.msra.mxu1 %v3434_v10  ;;  %v3333_v9 = vld [vmem:[%s3987_s1 + $0x18] sm:$0xff] }
 0x5dc   :  { %3139 = vmatprep.subr.mxu0 %v3349_v0  ;;  %3150 = vmatprep.subr.mxu1 %v3349_v0  ;;  %v3334_v10 = vld [vmem:[%s3987_s1 + $0x38] sm:$0xff] }
 0x5dd   :  { %3140 = vmatpush3.msra.mxu0 %v3443_v11  ;;  %3151 = vmatpush3.msra.mxu1 %v3448_v12  ;;  %v3335_v11 = vld [vmem:[%s3987_s1 + $0x10] sm:$0xff] }
 0x5de   :  { %3141 = vmatprep.subr.mxu0 %v3349_v0  ;;  %3152 = vmatprep.subr.mxu1 %v3349_v0  ;;  %v3336_v12 = vld [vmem:[%s3987_s1 + $0x30] sm:$0xff] }
 0x5df   :  { %3142 = vmatpush3.msra.mxu0 %v3457_v13  ;;  %3153 = vmatpush3.msra.mxu1 %v3462_v14  ;;  %v3337_v13 = vld [vmem:[%s3987_s1 + $0x8] sm:$0xff] }
 0x5e0   :  { %3143 = vmatprep.subr.mxu0 %v3349_v0  ;;  %3154 = vmatprep.subr.mxu1 %v3349_v0  ;;  %v3338_v14 = vld [vmem:[%s3987_s1 + $0x28] sm:$0xff] }
 0x5e1   :  { %3144 = vmatpush3.msra.mxu0 %v3471_v15  ;;  %3145 = vmatprep.mubr.msk.f32.mxu0 %vm3350_vm0, %v3349_v0  ;;  %v3339_v15 = vld [vmem:[%s3987_s1] sm:$0xff] }
 0x5e2   :  { %3155 = vmatpush3.msra.mxu1 %v3478_v16  ;;  %3156 = vmatprep.mubr.msk.f32.mxu1 %vm3350_vm0, %v3349_v0  ;;  %v3340_v16 = vld [vmem:[%s3987_s1 + $0x20] sm:$0xff] }
 0x5e3   :  { %3146 = vmatmul.mubr.msk.f32.vlgmr.msra.gmra.mxu0 %vm31_vm1, %v1948_v28  ;;  %3157 = vmatmul.mubr.msk.f32.vlgmr.msra.gmra.mxu1 %vm31_vm1, %v1948_v28 }
 0x5e4   :  { %3159 = vmatprep.subr.mxu0 %v3349_v0  ;;  %3170 = vmatprep.subr.mxu1 %v3349_v0 }
 0x5e5   :  { %3160 = vmatpush3.msra.mxu0 %v3333_v9  ;;  %3171 = vmatpush3.msra.mxu1 %v3334_v10 }
 0x5e6   :  { %3161 = vmatprep.subr.mxu0 %v3349_v0  ;;  %3172 = vmatprep.subr.mxu1 %v3349_v0 }
 0x5e7   :  { %3162 = vmatpush3.msra.mxu0 %v3335_v11  ;;  %3173 = vmatpush3.msra.mxu1 %v3336_v12  ;;  %v2686_v12 = vld [vmem:[%s3988_s0 + $0xf0] sm:$0xff] }
 0x5e8   :  { %3163 = vmatprep.subr.mxu0 %v3349_v0  ;;  %3174 = vmatprep.subr.mxu1 %v3349_v0 }
 0x5e9   :  { %3164 = vmatpush3.msra.mxu0 %v3337_v13  ;;  %3175 = vmatpush3.msra.mxu1 %v3338_v14 }
 0x5ea   :  { %3165 = vmatprep.subr.mxu0 %v3349_v0  ;;  %3176 = vmatprep.subr.mxu1 %v3349_v0 }
 0x5eb   :  { %3166 = vmatpush3.msra.mxu0 %v3339_v15  ;;  %3177 = vmatpush3.msra.mxu1 %v3340_v16 }
 0x5ec   :  { %3167 = vmatprep.mubr.msk.f32.mxu0 %vm3350_vm0, %v3349_v0  ;;  %3178 = vmatprep.mubr.msk.f32.mxu1 %vm3350_vm0, %v3349_v0 }
 0x5ed   :  { %3181 = vmatprep.subr.mxu0 %v3349_v0  ;;  %3192 = vmatprep.subr.mxu1 %v3349_v0 }
 0x69a   :  { %v2021_v32 = vpop.f32.mrf.mxu0  ;;  %v2100_v33 = vpop.f32.mrf.mxu1 }
 0x69b   :  { %v2025_v34 = vadd.f32 %v2669_v30, %v2021_v32  ;;  %v2104_v35 = vadd.f32 %v2672_v31, %v2100_v33 }
 0x69c   :  { %v3125_v36 = vpop.f32.mrf.mxu0  ;;  %v3136_v37 = vpop.f32.mrf.mxu1 }
 0x69d   :  { %v2671_v38 = vmul.f32 -1.442695, %v2025_v34  ;;  %v2674_v39 = vmul.f32 -1.442695, %v2104_v35 }
 0x69f   :  { %3301 = vpow2.f32 %v2671_v38 }
 0x6a0   :  { %3303 = vpow2.f32 %v2674_v39 }
 0x6a3   :  { %v2179_v41 = vpop.f32.mrf.mxu0  ;;  %v2253_v42 = vpop.f32.mrf.mxu1 }
 0x6a4   :  { %v2257_v43 = vadd.f32 %v2677_v40, %v2253_v42  ;;  %v2183_v48 = vadd.f32 %v2675_v46, %v2179_v41 }
 0x6a5   :  { %v3147_v44 = vpop.f32.mrf.mxu0  ;;  %v3158_v45 = vpop.f32.mrf.mxu1 }
 0x6a6   :  { %v2679_v47 = vmul.f32 -1.442695, %v2257_v43 }
 0x6a8   :  { %3305 = vpow2.f32 %v2679_v47 }
 0x6a9   :  { %3307 = vtanh.f32 %v2183_v48 }
 0x6ac   :  { %v3302_v49 = vpop.eup %3301 }
 0x6ad   :  { %v3304_v1 = vpop.eup %3303  ;;  %v2029_v2 = vadd.f32 1.0, %v3302_v49 }
 0x6ae   :  { %v2108_v3 = vadd.f32 1.0, %v3304_v1 }
 0x6af   :  { %3309 = vrcp.f32 %v2029_v2 }
 0x6b0   :  { %3311 = vrcp.f32 %v2108_v3 }
 0x6b5   :  { %v3306_v4 = vpop.eup %3305 }
 0x6b6   :  { %v3308_v5 = vpop.eup %3307  ;;  %v2261_v51 = vadd.f32 1.0, %v3306_v4 }
 0x6b8   :  { %3313 = vrcp.f32 %v2261_v51 }
 0x6bc   :  { %v3310_v6 = vpop.eup %3309 }
 0x6bd   :  { %v3312_v7 = vpop.eup %3311  ;;  %v2265_v8 = vmul.f32 %v3310_v6, %v3308_v5 }
 0x6be   :  { %v2264_v52 = vmul.f32 %v3312_v7, %v3846_v26 }
 0x6c0   :  { %v3925_v53 = vadd.f32 %v2265_v8, %v2264_v52 }
 0x6c2   :  { %3315 = vtanh.f32 %v3925_v53 }
 0x6c5   :  { %v3314_v54 = vpop.eup %3313 }
 0x6cf   :  { %v3316_v55 = vpop.eup %3315 }
 0x6d0   :  { %v2268_v56 = vmul.f32 %v3316_v55, %v3314_v54 }
 0x6d2   :  { %3168 = vmatmul.mubr.msk.f32.vlgmr.msra.gmra.mxu0 %vm31_vm1, %v2268_v56  ;;  %3179 = vmatmul.mubr.msk.f32.vlgmr.msra.gmra.mxu1 %vm31_vm1, %v2268_v56  ;;  %v3931_v57 = vadd.f32 %v2268_v56, %v3850_v29 }
 0x6d3   :  { %3182 = vmatpush3.msra.mxu0 %v3341_v58  ;;  %3193 = vmatpush3.msra.mxu1 %v3342_v59 }
 0x6d4   :  { %3183 = vmatprep.subr.mxu0 %v3349_v0  ;;  %3194 = vmatprep.subr.mxu1 %v3349_v0 }
 0x6d5   :  { %3184 = vmatpush3.msra.mxu0 %v3343_v60  ;;  %3195 = vmatpush3.msra.mxu1 %v3344_v61 }
 0x6d6   :  { %3185 = vmatprep.subr.mxu0 %v3349_v0  ;;  %3196 = vmatprep.subr.mxu1 %v3349_v0 }
 0x6d7   :  { %3186 = vmatpush3.msra.mxu0 %v3345_v62  ;;  %3197 = vmatpush3.msra.mxu1 %v3346_v63 }
 0x6d8   :  { %3187 = vmatprep.subr.mxu0 %v3349_v0  ;;  %3198 = vmatprep.subr.mxu1 %v3349_v0 }
 0x6d9   :  { %3188 = vmatpush3.msra.mxu0 %v3347_v17  ;;  %3189 = vmatprep.mubr.msk.f32.mxu0 %vm3350_vm0, %v3349_v0 }
 0x6da   :  { %3199 = vmatpush3.msra.mxu1 %v3348_v18  ;;  %3200 = vmatprep.mubr.msk.f32.mxu1 %vm3350_vm0, %v3349_v0 }
 0x6db   :  { %3190 = vmatmul.mubr.msk.f32.vlgmr.msra.gmra.mxu0 %vm31_vm1, %v2268_v56  ;;  %3201 = vmatmul.mubr.msk.f32.vlgmr.msra.gmra.mxu1 %vm31_vm1, %v2268_v56 }
 0x792   :  { %v2341_v21 = vpop.f32.mrf.mxu0  ;;  %v2420_v22 = vpop.f32.mrf.mxu1 }
 0x793   :  { %v2345_v23 = vadd.f32 %v2680_v19, %v2341_v21  ;;  %v2424_v24 = vadd.f32 %v2683_v20, %v2420_v22 }
 0x794   :  { %v3169_v25 = vpop.f32.mrf.mxu0  ;;  %v3180_v26 = vpop.f32.mrf.mxu1 }
 0x795   :  { %v2682_v27 = vmul.f32 -1.442695, %v2345_v23  ;;  %v2685_v0 = vmul.f32 -1.442695, %v2424_v24 }
 0x797   :  { %3317 = vpow2.f32 %v2682_v27 }
 0x798   :  { %3319 = vpow2.f32 %v2685_v0 }
 0x79b   :  { %v2499_v28 = vpop.f32.mrf.mxu0  ;;  %v2573_v29 = vpop.f32.mrf.mxu1 }
 0x79c   :  { %v2577_v9 = vadd.f32 %v2688_v50, %v2573_v29  ;;  %v2503_v14 = vadd.f32 %v2686_v12, %v2499_v28 }
 0x79d   :  { %v3191_v10 = vpop.f32.mrf.mxu0  ;;  %v3202_v11 = vpop.f32.mrf.mxu1 }
 0x79e   :  { %v2690_v13 = vmul.f32 -1.442695, %v2577_v9 }
 0x7a0   :  { %3321 = vpow2.f32 %v2690_v13 }
 0x7a1   :  { %3323 = vtanh.f32 %v2503_v14 }
 0x7a4   :  { %v3318_v15 = vpop.eup %3317 }
 0x7a5   :  { %v3320_v16 = vpop.eup %3319  ;;  %v2349_v30 = vadd.f32 1.0, %v3318_v15 }
 0x7a6   :  { %v2428_v31 = vadd.f32 1.0, %v3320_v16 }
 0x7a7   :  { %3325 = vrcp.f32 %v2349_v30 }
 0x7a8   :  { %3327 = vrcp.f32 %v2428_v31 }
 0x7ad   :  { %v3322_v32 = vpop.eup %3321 }
 0x7ae   :  { %v3324_v33 = vpop.eup %3323  ;;  %v2581_v37 = vadd.f32 1.0, %v3322_v32 }
 0x7b0   :  { %3329 = vrcp.f32 %v2581_v37 }
 0x7b4   :  { %v3326_v34 = vpop.eup %3325 }
 0x7b5   :  { %v3328_v35 = vpop.eup %3327  ;;  %v2585_v36 = vmul.f32 %v3326_v34, %v3324_v33 }
 0x7b6   :  { %v2584_v38 = vmul.f32 %v3328_v35, %v3925_v53 }
 0x7b8   :  { %v2586_v39 = vadd.f32 %v2585_v36, %v2584_v38 }
 0x7ba   :  { %3331 = vtanh.f32 %v2586_v39 }
 0x7bd   :  { %v3330_v40 = vpop.eup %3329 }
 0x7c7   :  { %v3332_v41 = vpop.eup %3331 }
 0x7c8   :  { %v2588_v42 = vmul.f32 %v3332_v41, %v3330_v40 }
 0x7ca   :  { %v2589_v43 = vadd.f32 %v2588_v42, %v3931_v57 }
 0x7cc   :  { %v2590_v44 = vmul.f32 0.125, %v2589_v43 }
 0x7ce   :  { %2591 = vst.msk [vmem:[%s3989_s2] sm:$0xff] %vm31_vm1, %v2590_v44 }

</bundles_post_ra>
